<compile_context>
chip_gen: v5e
topology: v5e:2x2
jax: 0.10.0
libtpu: 0.0.40
codegen_flags: <defaults>
</compile_context>

<pallas_src>
import math
import numpy as np
import jax
import jax.numpy as jnp
from jax import lax
from jax.experimental import pallas as pl
from jax.experimental.pallas import tpu as pltpu

NEG_SLOPE = 0.01  # F.leaky_relu default


def _leaky(v):
    return jnp.where(v >= 0, v, NEG_SLOPE * v)


def _round_up(x, m):
    return ((x + m - 1) // m) * m


def _make_glconv_kernel(cin_p, cout_p, w_p, Np, padL, fm_sign, top_rows, bot_rows):
    """Per-(batch, frame) kernel body.  All sizes static."""
    nine = 9 * cin_p

    def kernel(xm1_ref, x0_ref, xp1_ref, w_ref, o_ref, p_ref, acc_ref):
        # xm1/x0/xp1 : (cin_p, Lp)   frames d-1, d, d+1 (depth-padded, pitched rows)
        # w_ref      : (2*cout_p, 27*cin_p)  [Wg ; Wl] im2col-flattened
        # o_ref      : (cout_p, Np) or (2, cout_p, Np)
        # p_ref      : (27*cin_p, Np)  im2col patch matrix (VMEM scratch)
        # acc_ref    : (2*cout_p, Np)  f32 accumulator scratch
        frames = (xm1_ref, x0_ref, xp1_ref)

        # ---- im2col: K ordered (kh, kd, kw, cin_p) so the kh==0 / kh==2 tap
        # blocks are contiguous (needed for the narrow local-conv corrections).
        # The pitched-row zero gaps + lead/trail zero lanes make every shifted
        # slice already correctly zero-padded for the *global* conv.
        for kh in range(3):
            for kd in range(3):
                for kw in range(3):
                    t = (kh * 3 + kd) * 3 + kw
                    a0 = padL + (kh - 1) * w_p + (kw - 1)
                    p_ref[t * cin_p:(t + 1) * cin_p, :] = frames[kd][:, a0:a0 + Np]

        # ---- one stacked MXU matmul per frame: rows [0,cout_p) = global conv,
        # rows [cout_p, 2*cout_p) = local conv before boundary fix-up.
        acc_ref[...] = jnp.dot(w_ref[...], p_ref[...],
                               preferred_element_type=jnp.float32)

        # ---- local conv differs from the global conv only at rows adjacent to
        # interior h-chunk boundaries: subtract the kh==0 / kh==2 contribution
        # on those narrow, static column ranges (one row = w_p columns each).
        for r in top_rows:
            c0 = r * w_p
            corr = jnp.dot(w_ref[cout_p:, 0:nine], p_ref[0:nine, c0:c0 + w_p],
                           preferred_element_type=jnp.float32)
            acc_ref[cout_p:, c0:c0 + w_p] = acc_ref[cout_p:, c0:c0 + w_p] - corr
        for r in bot_rows:
            c0 = r * w_p
            corr = jnp.dot(w_ref[cout_p:, 2 * nine:], p_ref[2 * nine:, c0:c0 + w_p],
                           preferred_element_type=jnp.float32)
            acc_ref[cout_p:, c0:c0 + w_p] = acc_ref[cout_p:, c0:c0 + w_p] - corr

        gob = _leaky(acc_ref[0:cout_p, :])
        lcl = _leaky(acc_ref[cout_p:, :])
        if fm_sign:
            o_ref[0, :, :] = gob.astype(o_ref.dtype)
            o_ref[1, :, :] = lcl.astype(o_ref.dtype)
        else:
            o_ref[...] = (gob + lcl).astype(o_ref.dtype)

    return kernel


def glconv_pallas(x, w_global, w_local, halving, fm_sign=False,
                  compute_dtype=jnp.bfloat16):
    """GLConv forward.

    x:        [n, cin, s, h, w]   (PyTorch NCDHW)
    w_global: [cout, cin, 3, 3, 3]
    w_local:  [cout, cin, 3, 3, 3]
    returns   [n, cout, s, h_out, w], h_out = h (fm_sign=False) or 2h (True)
    """
    n, cin, s, h, w = x.shape
    cout = w_global.shape[0]
    split = h if halving == 0 else h // (2 ** halving)
    assert split >= 1 and h % split == 0, "h must be divisible by 2**halving"

    # sublane alignment of channel blocks (bf16 packs 16 rows per vreg tile)
    al = 8 if compute_dtype == jnp.float32 else 16
    cin_p = _round_up(cin, al)
    cout_p = _round_up(cout, al)
    K = 27 * cin_p

    # Pitched row layout: >=2 zero lanes between image rows make the conv's
    # left/right zero padding automatic; round w_p so h*w_p is a multiple of
    # 128 lanes when that is cheap (lane-dense stores).
    w_p = w + 2
    g = 128 // math.gcd(h, 128)
    if g <= 32:
        w_p = _round_up(w_p, g)
    Np = h * w_p
    padL = w_p + 1          # leading zeros cover the kh=-1 taps of image row 0
    padR = w_p + 1
    Lp = padL + Np + padR

    out_dtype = x.dtype

    # ---- input prep (one-time XLA transpose/pads, all zero fills) -----------
    # (n,c,s,h,w) -> frame-major (n, s+2, cin_p, Lp), (h,w_p) flattened to lanes.
    xt = jnp.transpose(x, (0, 2, 1, 3, 4)).astype(compute_dtype)
    xt = jnp.pad(xt, ((0, 0), (1, 1), (0, cin_p - cin), (0, 0), (0, w_p - w)))
    xt = xt.reshape(n, s + 2, cin_p, Np)
    x_pad = jnp.pad(xt, ((0, 0), (0, 0), (0, 0), (padL, padR)))

    # ---- weights OIDHW -> stacked (2*cout_p, 27*cin_p), K ordered (kh,kd,kw,c)
    def _flat_w(wt):
        wt = jnp.transpose(wt, (0, 3, 2, 4, 1))                 # (cout,kh,kd,kw,cin)
        wt = jnp.pad(wt, ((0, cout_p - cout), (0, 0), (0, 0), (0, 0),
                          (0, cin_p - cin)))
        return wt.reshape(cout_p, K).astype(compute_dtype)

    w_stacked = jnp.concatenate([_flat_w(w_global), _flat_w(w_local)], axis=0)

    # interior chunk boundaries of the local conv (static lists)
    top_rows = [r for r in range(h) if r % split == 0 and r != 0]
    bot_rows = [r for r in range(h) if r % split == split - 1 and r != h - 1]

    kernel = _make_glconv_kernel(cin_p, cout_p, w_p, Np, padL, fm_sign,
                                 top_rows, bot_rows)

    if fm_sign:
        out_shape = jax.ShapeDtypeStruct((n, s, 2, cout_p, Np), out_dtype)
        out_spec = pl.BlockSpec((None, None, 2, cout_p, Np),
                                lambda b, d: (b, d, 0, 0, 0))
    else:
        out_shape = jax.ShapeDtypeStruct((n, s, cout_p, Np), out_dtype)
        out_spec = pl.BlockSpec((None, None, cout_p, Np),
                                lambda b, d: (b, d, 0, 0))

    # per-step VMEM estimate -> explicit limit with headroom
    itm = jnp.dtype(compute_dtype).itemsize
    out_blk = (2 if fm_sign else 1) * cout_p * Np * jnp.dtype(out_dtype).itemsize
    est = (2 * (3 * cin_p * Lp * itm + out_blk)      # double-buffered in/out blocks
           + 2 * cout_p * K * itm                     # weights (fetched once)
           + K * Np * itm + 2 * cout_p * Np * 4)      # scratches
    vmem_limit = int(max(32 * 2 ** 20, est * 3 // 2))

    def frame_spec(off):
        return pl.BlockSpec((None, None, cin_p, Lp),
                            lambda b, d, _o=off: (b, d + _o, 0, 0))

    out = pl.pallas_call(
        kernel,
        out_shape=out_shape,
        grid_spec=pltpu.PrefetchScalarGridSpec(
            num_scalar_prefetch=0,
            grid=(n, s),
            in_specs=[
                frame_spec(0), frame_spec(1), frame_spec(2),   # frames d-1, d, d+1
                pl.BlockSpec((2 * cout_p, K), lambda b, d: (0, 0)),
            ],
            out_specs=out_spec,
            scratch_shapes=[
                pltpu.VMEM((K, Np), compute_dtype),
                pltpu.VMEM((2 * cout_p, Np), jnp.float32),
            ],
        ),
        compiler_params=pltpu.CompilerParams(
            dimension_semantics=("parallel", "parallel"),
            vmem_limit_bytes=vmem_limit),
    )(x_pad, x_pad, x_pad, w_stacked)

    # ---- back to [n, cout, s, h_out, w] (cheap XLA slice/transpose) ----------
    if fm_sign:
        out = out.reshape(n, s, 2, cout_p, h, w_p)[:, :, :, :cout, :, :w]
        out = jnp.transpose(out, (0, 3, 1, 2, 4, 5)).reshape(n, cout, s, 2 * h, w)
    else:
        out = out.reshape(n, s, cout_p, h, w_p)[:, :, :cout, :, :w]
        out = jnp.transpose(out, (0, 2, 1, 3, 4))
    return out


# ----------------------------- pure-JAX reference ----------------------------
def _conv3d_ref(x, w, compute_dtype):  # NCDHW, OIDHW, stride 1, padding 1, no bias
    return lax.conv_general_dilated(
        x.astype(compute_dtype), w.astype(compute_dtype),
        window_strides=(1, 1, 1), padding=[(1, 1)] * 3,
        dimension_numbers=('NCDHW', 'OIDHW', 'NCDHW'),
        preferred_element_type=jnp.float32,
        precision=lax.Precision.HIGHEST)


def glconv_ref(x, w_global, w_local, halving, fm_sign=False,
               compute_dtype=jnp.float32):
    gob = _conv3d_ref(x, w_global, compute_dtype)
    if halving == 0:
        lcl = _conv3d_ref(x, w_local, compute_dtype)
    else:
        chunks = jnp.split(x, 2 ** halving, axis=3)
        lcl = jnp.concatenate(
            [_conv3d_ref(ch, w_local, compute_dtype) for ch in chunks], axis=3)
    if not fm_sign:
        return _leaky(gob) + _leaky(lcl)
    return _leaky(jnp.concatenate([gob, lcl], axis=3))


# ------------------------------------ main ------------------------------------
if __name__ == "__main__":
    # small shapes: n=2, cin=4, cout=4, seq s=8, h=16, w=16
    n, cin, cout, s, h, w = 2, 4, 4, 8, 16, 16

    key = jax.random.PRNGKey(0)
    kx, kg, kl = jax.random.split(key, 3)
    x = jax.random.normal(kx, (n, cin, s, h, w), jnp.float32)
    w_global = jax.random.normal(kg, (cout, cin, 3, 3, 3), jnp.float32) * 0.1
    w_local = jax.random.normal(kl, (cout, cin, 3, 3, 3), jnp.float32) * 0.1

    # (halving, fm_sign, compute_dtype, tolerance)
    configs = [
        (1, False, jnp.float32, 1e-3),
        (1, True, jnp.bfloat16, 2e-2),
        (2, False, jnp.bfloat16, 2e-2),
        (0, True, jnp.bfloat16, 2e-2),
    ]

    ok = True
    for halving, fm_sign, cdt, tol in configs:
        out = glconv_pallas(x, w_global, w_local, halving, fm_sign=fm_sign,
                            compute_dtype=cdt)
        out = jax.block_until_ready(out)
        ref = glconv_ref(x, w_global, w_local, halving, fm_sign=fm_sign,
                         compute_dtype=cdt)
        ref = jax.block_until_ready(ref)
        if out.shape != ref.shape:
            ok = False
            print("shape mismatch", (halving, fm_sign, str(cdt)),
                  out.shape, ref.shape)
            continue
        if not jnp.allclose(out, ref, rtol=tol, atol=tol):
            ok = False
            print("value mismatch", (halving, fm_sign, str(cdt)),
                  "max abs err:", float(jnp.max(jnp.abs(out - ref))))

    if ok:
        print("KERNEL_OK")
</pallas_src>

<mosaic_0001>
module attributes {stable_mosaic.version = 11 : i64} {
  func.func @kernel(%arg0: i32, %arg1: i32, %arg2: memref<1x1x8x434xf32, #tpu.memory_space<vmem>>, %arg3: memref<1x1x8x434xf32, #tpu.memory_space<vmem>>, %arg4: memref<1x1x8x434xf32, #tpu.memory_space<vmem>>, %arg5: memref<16x216xf32, #tpu.memory_space<vmem>>, %arg6: memref<1x1x8x384xf32, #tpu.memory_space<vmem>>, %arg7: memref<216x384xf32, #tpu.memory_space<vmem>>, %arg8: memref<16x384xf32, #tpu.memory_space<vmem>>) attributes {dimension_semantics = [#tpu.dimension_semantics<parallel>, #tpu.dimension_semantics<parallel>], iteration_bounds = array<i64: 2, 8>, scalar_prefetch = 0 : i64, scratch_operands = 2 : i64, tpu.core_type = #tpu.core_type<tc>, window_params = [{transform_indices = @transform_0, window_bounds = array<i64: 1, 1, 8, 434>}, {transform_indices = @transform_1, window_bounds = array<i64: 1, 1, 8, 434>}, {transform_indices = @transform_2, window_bounds = array<i64: 1, 1, 8, 434>}, {pipeline_mode = #tpu.pipeline_mode<synchronous>, transform_indices = @transform_3, window_bounds = array<i64: 16, 216>}, {transform_indices = @transform_4, window_bounds = array<i64: 1, 1, 8, 384>}]} {
    %c0 = arith.constant 0 : index
    %c0_0 = arith.constant 0 : index
    %c0_1 = arith.constant 0 : index
    %c0_2 = arith.constant 0 : index
    %0 = vector.load %arg2[%c0, %c0_0, %c0_1, %c0_2] : memref<1x1x8x434xf32, #tpu.memory_space<vmem>>, vector<1x1x8x384xf32>
    %1 = vector.shape_cast %0 : vector<1x1x8x384xf32> to vector<8x384xf32>
    %c0_3 = arith.constant 0 : index
    %c0_4 = arith.constant 0 : index
    %2 = vector.load %arg7[%c0_3, %c0_4] : memref<216x384xf32, #tpu.memory_space<vmem>>, vector<8x384xf32>
    tpu.vector_store %arg7[%c0_3, %c0_4], %1 {strides = array<i32>} : memref<216x384xf32, #tpu.memory_space<vmem>>, vector<8x384xf32>,
    %c0_5 = arith.constant 0 : index
    %c0_6 = arith.constant 0 : index
    %c0_7 = arith.constant 0 : index
    %c1 = arith.constant 1 : index
    %3 = vector.load %arg2[%c0_5, %c0_6, %c0_7, %c1] : memref<1x1x8x434xf32, #tpu.memory_space<vmem>>, vector<1x1x8x384xf32>
    %4 = vector.shape_cast %3 : vector<1x1x8x384xf32> to vector<8x384xf32>
    %c8 = arith.constant 8 : index
    %c0_8 = arith.constant 0 : index
    %5 = vector.load %arg7[%c8, %c0_8] : memref<216x384xf32, #tpu.memory_space<vmem>>, vector<8x384xf32>
    tpu.vector_store %arg7[%c8, %c0_8], %4 {strides = array<i32>} : memref<216x384xf32, #tpu.memory_space<vmem>>, vector<8x384xf32>,
    %c0_9 = arith.constant 0 : index
    %c0_10 = arith.constant 0 : index
    %c0_11 = arith.constant 0 : index
    %c2 = arith.constant 2 : index
    %6 = vector.load %arg2[%c0_9, %c0_10, %c0_11, %c2] : memref<1x1x8x434xf32, #tpu.memory_space<vmem>>, vector<1x1x8x384xf32>
    %7 = vector.shape_cast %6 : vector<1x1x8x384xf32> to vector<8x384xf32>
    %c16 = arith.constant 16 : index
    %c0_12 = arith.constant 0 : index
    %8 = vector.load %arg7[%c16, %c0_12] : memref<216x384xf32, #tpu.memory_space<vmem>>, vector<8x384xf32>
    tpu.vector_store %arg7[%c16, %c0_12], %7 {strides = array<i32>} : memref<216x384xf32, #tpu.memory_space<vmem>>, vector<8x384xf32>,
    %c0_13 = arith.constant 0 : index
    %c0_14 = arith.constant 0 : index
    %c0_15 = arith.constant 0 : index
    %c0_16 = arith.constant 0 : index
    %9 = vector.load %arg3[%c0_13, %c0_14, %c0_15, %c0_16] : memref<1x1x8x434xf32, #tpu.memory_space<vmem>>, vector<1x1x8x384xf32>
    %10 = vector.shape_cast %9 : vector<1x1x8x384xf32> to vector<8x384xf32>
    %c24 = arith.constant 24 : index
    %c0_17 = arith.constant 0 : index
    %11 = vector.load %arg7[%c24, %c0_17] : memref<216x384xf32, #tpu.memory_space<vmem>>, vector<8x384xf32>
    tpu.vector_store %arg7[%c24, %c0_17], %10 {strides = array<i32>} : memref<216x384xf32, #tpu.memory_space<vmem>>, vector<8x384xf32>,
    %c0_18 = arith.constant 0 : index
    %c0_19 = arith.constant 0 : index
    %c0_20 = arith.constant 0 : index
    %c1_21 = arith.constant 1 : index
    %12 = vector.load %arg3[%c0_18, %c0_19, %c0_20, %c1_21] : memref<1x1x8x434xf32, #tpu.memory_space<vmem>>, vector<1x1x8x384xf32>
    %13 = vector.shape_cast %12 : vector<1x1x8x384xf32> to vector<8x384xf32>
    %c32 = arith.constant 32 : index
    %c0_22 = arith.constant 0 : index
    %14 = vector.load %arg7[%c32, %c0_22] : memref<216x384xf32, #tpu.memory_space<vmem>>, vector<8x384xf32>
    tpu.vector_store %arg7[%c32, %c0_22], %13 {strides = array<i32>} : memref<216x384xf32, #tpu.memory_space<vmem>>, vector<8x384xf32>,
    %c0_23 = arith.constant 0 : index
    %c0_24 = arith.constant 0 : index
    %c0_25 = arith.constant 0 : index
    %c2_26 = arith.constant 2 : index
    %15 = vector.load %arg3[%c0_23, %c0_24, %c0_25, %c2_26] : memref<1x1x8x434xf32, #tpu.memory_space<vmem>>, vector<1x1x8x384xf32>
    %16 = vector.shape_cast %15 : vector<1x1x8x384xf32> to vector<8x384xf32>
    %c40 = arith.constant 40 : index
    %c0_27 = arith.constant 0 : index
    %17 = vector.load %arg7[%c40, %c0_27] : memref<216x384xf32, #tpu.memory_space<vmem>>, vector<8x384xf32>
    tpu.vector_store %arg7[%c40, %c0_27], %16 {strides = array<i32>} : memref<216x384xf32, #tpu.memory_space<vmem>>, vector<8x384xf32>,
    %c0_28 = arith.constant 0 : index
    %c0_29 = arith.constant 0 : index
    %c0_30 = arith.constant 0 : index
    %c0_31 = arith.constant 0 : index
    %18 = vector.load %arg4[%c0_28, %c0_29, %c0_30, %c0_31] : memref<1x1x8x434xf32, #tpu.memory_space<vmem>>, vector<1x1x8x384xf32>
    %19 = vector.shape_cast %18 : vector<1x1x8x384xf32> to vector<8x384xf32>
    %c48 = arith.constant 48 : index
    %c0_32 = arith.constant 0 : index
    %20 = vector.load %arg7[%c48, %c0_32] : memref<216x384xf32, #tpu.memory_space<vmem>>, vector<8x384xf32>
    tpu.vector_store %arg7[%c48, %c0_32], %19 {strides = array<i32>} : memref<216x384xf32, #tpu.memory_space<vmem>>, vector<8x384xf32>,
    %c0_33 = arith.constant 0 : index
    %c0_34 = arith.constant 0 : index
    %c0_35 = arith.constant 0 : index
    %c1_36 = arith.constant 1 : index
    %21 = vector.load %arg4[%c0_33, %c0_34, %c0_35, %c1_36] : memref<1x1x8x434xf32, #tpu.memory_space<vmem>>, vector<1x1x8x384xf32>
    %22 = vector.shape_cast %21 : vector<1x1x8x384xf32> to vector<8x384xf32>
    %c56 = arith.constant 56 : index
    %c0_37 = arith.constant 0 : index
    %23 = vector.load %arg7[%c56, %c0_37] : memref<216x384xf32, #tpu.memory_space<vmem>>, vector<8x384xf32>
    tpu.vector_store %arg7[%c56, %c0_37], %22 {strides = array<i32>} : memref<216x384xf32, #tpu.memory_space<vmem>>, vector<8x384xf32>,
    %c0_38 = arith.constant 0 : index
    %c0_39 = arith.constant 0 : index
    %c0_40 = arith.constant 0 : index
    %c2_41 = arith.constant 2 : index
    %24 = vector.load %arg4[%c0_38, %c0_39, %c0_40, %c2_41] : memref<1x1x8x434xf32, #tpu.memory_space<vmem>>, vector<1x1x8x384xf32>
    %25 = vector.shape_cast %24 : vector<1x1x8x384xf32> to vector<8x384xf32>
    %c64 = arith.constant 64 : index
    %c0_42 = arith.constant 0 : index
    %26 = vector.load %arg7[%c64, %c0_42] : memref<216x384xf32, #tpu.memory_space<vmem>>, vector<8x384xf32>
    tpu.vector_store %arg7[%c64, %c0_42], %25 {strides = array<i32>} : memref<216x384xf32, #tpu.memory_space<vmem>>, vector<8x384xf32>,
    %c0_43 = arith.constant 0 : index
    %c0_44 = arith.constant 0 : index
    %c0_45 = arith.constant 0 : index
    %c24_46 = arith.constant 24 : index
    %27 = vector.load %arg2[%c0_43, %c0_44, %c0_45, %c24_46] : memref<1x1x8x434xf32, #tpu.memory_space<vmem>>, vector<1x1x8x384xf32>
    %28 = vector.shape_cast %27 : vector<1x1x8x384xf32> to vector<8x384xf32>
    %c72 = arith.constant 72 : index
    %c0_47 = arith.constant 0 : index
    %29 = vector.load %arg7[%c72, %c0_47] : memref<216x384xf32, #tpu.memory_space<vmem>>, vector<8x384xf32>
    tpu.vector_store %arg7[%c72, %c0_47], %28 {strides = array<i32>} : memref<216x384xf32, #tpu.memory_space<vmem>>, vector<8x384xf32>,
    %c0_48 = arith.constant 0 : index
    %c0_49 = arith.constant 0 : index
    %c0_50 = arith.constant 0 : index
    %c25 = arith.constant 25 : index
    %30 = vector.load %arg2[%c0_48, %c0_49, %c0_50, %c25] : memref<1x1x8x434xf32, #tpu.memory_space<vmem>>, vector<1x1x8x384xf32>
    %31 = vector.shape_cast %30 : vector<1x1x8x384xf32> to vector<8x384xf32>
    %c80 = arith.constant 80 : index
    %c0_51 = arith.constant 0 : index
    %32 = vector.load %arg7[%c80, %c0_51] : memref<216x384xf32, #tpu.memory_space<vmem>>, vector<8x384xf32>
    tpu.vector_store %arg7[%c80, %c0_51], %31 {strides = array<i32>} : memref<216x384xf32, #tpu.memory_space<vmem>>, vector<8x384xf32>,
    %c0_52 = arith.constant 0 : index
    %c0_53 = arith.constant 0 : index
    %c0_54 = arith.constant 0 : index
    %c26 = arith.constant 26 : index
    %33 = vector.load %arg2[%c0_52, %c0_53, %c0_54, %c26] : memref<1x1x8x434xf32, #tpu.memory_space<vmem>>, vector<1x1x8x384xf32>
    %34 = vector.shape_cast %33 : vector<1x1x8x384xf32> to vector<8x384xf32>
    %c88 = arith.constant 88 : index
    %c0_55 = arith.constant 0 : index
    %35 = vector.load %arg7[%c88, %c0_55] : memref<216x384xf32, #tpu.memory_space<vmem>>, vector<8x384xf32>
    tpu.vector_store %arg7[%c88, %c0_55], %34 {strides = array<i32>} : memref<216x384xf32, #tpu.memory_space<vmem>>, vector<8x384xf32>,
    %c0_56 = arith.constant 0 : index
    %c0_57 = arith.constant 0 : index
    %c0_58 = arith.constant 0 : index
    %c24_59 = arith.constant 24 : index
    %36 = vector.load %arg3[%c0_56, %c0_57, %c0_58, %c24_59] : memref<1x1x8x434xf32, #tpu.memory_space<vmem>>, vector<1x1x8x384xf32>
    %37 = vector.shape_cast %36 : vector<1x1x8x384xf32> to vector<8x384xf32>
    %c96 = arith.constant 96 : index
    %c0_60 = arith.constant 0 : index
    %38 = vector.load %arg7[%c96, %c0_60] : memref<216x384xf32, #tpu.memory_space<vmem>>, vector<8x384xf32>
    tpu.vector_store %arg7[%c96, %c0_60], %37 {strides = array<i32>} : memref<216x384xf32, #tpu.memory_space<vmem>>, vector<8x384xf32>,
    %c0_61 = arith.constant 0 : index
    %c0_62 = arith.constant 0 : index
    %c0_63 = arith.constant 0 : index
    %c25_64 = arith.constant 25 : index
    %39 = vector.load %arg3[%c0_61, %c0_62, %c0_63, %c25_64] : memref<1x1x8x434xf32, #tpu.memory_space<vmem>>, vector<1x1x8x384xf32>
    %40 = vector.shape_cast %39 : vector<1x1x8x384xf32> to vector<8x384xf32>
    %c104 = arith.constant 104 : index
    %c0_65 = arith.constant 0 : index
    %41 = vector.load %arg7[%c104, %c0_65] : memref<216x384xf32, #tpu.memory_space<vmem>>, vector<8x384xf32>
    tpu.vector_store %arg7[%c104, %c0_65], %40 {strides = array<i32>} : memref<216x384xf32, #tpu.memory_space<vmem>>, vector<8x384xf32>,
    %c0_66 = arith.constant 0 : index
    %c0_67 = arith.constant 0 : index
    %c0_68 = arith.constant 0 : index
    %c26_69 = arith.constant 26 : index
    %42 = vector.load %arg3[%c0_66, %c0_67, %c0_68, %c26_69] : memref<1x1x8x434xf32, #tpu.memory_space<vmem>>, vector<1x1x8x384xf32>
    %43 = vector.shape_cast %42 : vector<1x1x8x384xf32> to vector<8x384xf32>
    %c112 = arith.constant 112 : index
    %c0_70 = arith.constant 0 : index
    %44 = vector.load %arg7[%c112, %c0_70] : memref<216x384xf32, #tpu.memory_space<vmem>>, vector<8x384xf32>
    tpu.vector_store %arg7[%c112, %c0_70], %43 {strides = array<i32>} : memref<216x384xf32, #tpu.memory_space<vmem>>, vector<8x384xf32>,
    %c0_71 = arith.constant 0 : index
    %c0_72 = arith.constant 0 : index
    %c0_73 = arith.constant 0 : index
    %c24_74 = arith.constant 24 : index
    %45 = vector.load %arg4[%c0_71, %c0_72, %c0_73, %c24_74] : memref<1x1x8x434xf32, #tpu.memory_space<vmem>>, vector<1x1x8x384xf32>
    %46 = vector.shape_cast %45 : vector<1x1x8x384xf32> to vector<8x384xf32>
    %c120 = arith.constant 120 : index
    %c0_75 = arith.constant 0 : index
    %47 = vector.load %arg7[%c120, %c0_75] : memref<216x384xf32, #tpu.memory_space<vmem>>, vector<8x384xf32>
    tpu.vector_store %arg7[%c120, %c0_75], %46 {strides = array<i32>} : memref<216x384xf32, #tpu.memory_space<vmem>>, vector<8x384xf32>,
    %c0_76 = arith.constant 0 : index
    %c0_77 = arith.constant 0 : index
    %c0_78 = arith.constant 0 : index
    %c25_79 = arith.constant 25 : index
    %48 = vector.load %arg4[%c0_76, %c0_77, %c0_78, %c25_79] : memref<1x1x8x434xf32, #tpu.memory_space<vmem>>, vector<1x1x8x384xf32>
    %49 = vector.shape_cast %48 : vector<1x1x8x384xf32> to vector<8x384xf32>
    %c128 = arith.constant 128 : index
    %c0_80 = arith.constant 0 : index
    %50 = vector.load %arg7[%c128, %c0_80] : memref<216x384xf32, #tpu.memory_space<vmem>>, vector<8x384xf32>
    tpu.vector_store %arg7[%c128, %c0_80], %49 {strides = array<i32>} : memref<216x384xf32, #tpu.memory_space<vmem>>, vector<8x384xf32>,
    %c0_81 = arith.constant 0 : index
    %c0_82 = arith.constant 0 : index
    %c0_83 = arith.constant 0 : index
    %c26_84 = arith.constant 26 : index
    %51 = vector.load %arg4[%c0_81, %c0_82, %c0_83, %c26_84] : memref<1x1x8x434xf32, #tpu.memory_space<vmem>>, vector<1x1x8x384xf32>
    %52 = vector.shape_cast %51 : vector<1x1x8x384xf32> to vector<8x384xf32>
    %c136 = arith.constant 136 : index
    %c0_85 = arith.constant 0 : index
    %53 = vector.load %arg7[%c136, %c0_85] : memref<216x384xf32, #tpu.memory_space<vmem>>, vector<8x384xf32>
    tpu.vector_store %arg7[%c136, %c0_85], %52 {strides = array<i32>} : memref<216x384xf32, #tpu.memory_space<vmem>>, vector<8x384xf32>,
    %c0_86 = arith.constant 0 : index
    %c0_87 = arith.constant 0 : index
    %c0_88 = arith.constant 0 : index
    %c48_89 = arith.constant 48 : index
    %54 = vector.load %arg2[%c0_86, %c0_87, %c0_88, %c48_89] : memref<1x1x8x434xf32, #tpu.memory_space<vmem>>, vector<1x1x8x384xf32>
    %55 = vector.shape_cast %54 : vector<1x1x8x384xf32> to vector<8x384xf32>
    %c144 = arith.constant 144 : index
    %c0_90 = arith.constant 0 : index
    %56 = vector.load %arg7[%c144, %c0_90] : memref<216x384xf32, #tpu.memory_space<vmem>>, vector<8x384xf32>
    tpu.vector_store %arg7[%c144, %c0_90], %55 {strides = array<i32>} : memref<216x384xf32, #tpu.memory_space<vmem>>, vector<8x384xf32>,
    %c0_91 = arith.constant 0 : index
    %c0_92 = arith.constant 0 : index
    %c0_93 = arith.constant 0 : index
    %c49 = arith.constant 49 : index
    %57 = vector.load %arg2[%c0_91, %c0_92, %c0_93, %c49] : memref<1x1x8x434xf32, #tpu.memory_space<vmem>>, vector<1x1x8x384xf32>
    %58 = vector.shape_cast %57 : vector<1x1x8x384xf32> to vector<8x384xf32>
    %c152 = arith.constant 152 : index
    %c0_94 = arith.constant 0 : index
    %59 = vector.load %arg7[%c152, %c0_94] : memref<216x384xf32, #tpu.memory_space<vmem>>, vector<8x384xf32>
    tpu.vector_store %arg7[%c152, %c0_94], %58 {strides = array<i32>} : memref<216x384xf32, #tpu.memory_space<vmem>>, vector<8x384xf32>,
    %c0_95 = arith.constant 0 : index
    %c0_96 = arith.constant 0 : index
    %c0_97 = arith.constant 0 : index
    %c50 = arith.constant 50 : index
    %60 = vector.load %arg2[%c0_95, %c0_96, %c0_97, %c50] : memref<1x1x8x434xf32, #tpu.memory_space<vmem>>, vector<1x1x8x384xf32>
    %61 = vector.shape_cast %60 : vector<1x1x8x384xf32> to vector<8x384xf32>
    %c160 = arith.constant 160 : index
    %c0_98 = arith.constant 0 : index
    %62 = vector.load %arg7[%c160, %c0_98] : memref<216x384xf32, #tpu.memory_space<vmem>>, vector<8x384xf32>
    tpu.vector_store %arg7[%c160, %c0_98], %61 {strides = array<i32>} : memref<216x384xf32, #tpu.memory_space<vmem>>, vector<8x384xf32>,
    %c0_99 = arith.constant 0 : index
    %c0_100 = arith.constant 0 : index
    %c0_101 = arith.constant 0 : index
    %c48_102 = arith.constant 48 : index
    %63 = vector.load %arg3[%c0_99, %c0_100, %c0_101, %c48_102] : memref<1x1x8x434xf32, #tpu.memory_space<vmem>>, vector<1x1x8x384xf32>
    %64 = vector.shape_cast %63 : vector<1x1x8x384xf32> to vector<8x384xf32>
    %c168 = arith.constant 168 : index
    %c0_103 = arith.constant 0 : index
    %65 = vector.load %arg7[%c168, %c0_103] : memref<216x384xf32, #tpu.memory_space<vmem>>, vector<8x384xf32>
    tpu.vector_store %arg7[%c168, %c0_103], %64 {strides = array<i32>} : memref<216x384xf32, #tpu.memory_space<vmem>>, vector<8x384xf32>,
    %c0_104 = arith.constant 0 : index
    %c0_105 = arith.constant 0 : index
    %c0_106 = arith.constant 0 : index
    %c49_107 = arith.constant 49 : index
    %66 = vector.load %arg3[%c0_104, %c0_105, %c0_106, %c49_107] : memref<1x1x8x434xf32, #tpu.memory_space<vmem>>, vector<1x1x8x384xf32>
    %67 = vector.shape_cast %66 : vector<1x1x8x384xf32> to vector<8x384xf32>
    %c176 = arith.constant 176 : index
    %c0_108 = arith.constant 0 : index
    %68 = vector.load %arg7[%c176, %c0_108] : memref<216x384xf32, #tpu.memory_space<vmem>>, vector<8x384xf32>
    tpu.vector_store %arg7[%c176, %c0_108], %67 {strides = array<i32>} : memref<216x384xf32, #tpu.memory_space<vmem>>, vector<8x384xf32>,
    %c0_109 = arith.constant 0 : index
    %c0_110 = arith.constant 0 : index
    %c0_111 = arith.constant 0 : index
    %c50_112 = arith.constant 50 : index
    %69 = vector.load %arg3[%c0_109, %c0_110, %c0_111, %c50_112] : memref<1x1x8x434xf32, #tpu.memory_space<vmem>>, vector<1x1x8x384xf32>
    %70 = vector.shape_cast %69 : vector<1x1x8x384xf32> to vector<8x384xf32>
    %c184 = arith.constant 184 : index
    %c0_113 = arith.constant 0 : index
    %71 = vector.load %arg7[%c184, %c0_113] : memref<216x384xf32, #tpu.memory_space<vmem>>, vector<8x384xf32>
    tpu.vector_store %arg7[%c184, %c0_113], %70 {strides = array<i32>} : memref<216x384xf32, #tpu.memory_space<vmem>>, vector<8x384xf32>,
    %c0_114 = arith.constant 0 : index
    %c0_115 = arith.constant 0 : index
    %c0_116 = arith.constant 0 : index
    %c48_117 = arith.constant 48 : index
    %72 = vector.load %arg4[%c0_114, %c0_115, %c0_116, %c48_117] : memref<1x1x8x434xf32, #tpu.memory_space<vmem>>, vector<1x1x8x384xf32>
    %73 = vector.shape_cast %72 : vector<1x1x8x384xf32> to vector<8x384xf32>
    %c192 = arith.constant 192 : index
    %c0_118 = arith.constant 0 : index
    %74 = vector.load %arg7[%c192, %c0_118] : memref<216x384xf32, #tpu.memory_space<vmem>>, vector<8x384xf32>
    tpu.vector_store %arg7[%c192, %c0_118], %73 {strides = array<i32>} : memref<216x384xf32, #tpu.memory_space<vmem>>, vector<8x384xf32>,
    %c0_119 = arith.constant 0 : index
    %c0_120 = arith.constant 0 : index
    %c0_121 = arith.constant 0 : index
    %c49_122 = arith.constant 49 : index
    %75 = vector.load %arg4[%c0_119, %c0_120, %c0_121, %c49_122] : memref<1x1x8x434xf32, #tpu.memory_space<vmem>>, vector<1x1x8x384xf32>
    %76 = vector.shape_cast %75 : vector<1x1x8x384xf32> to vector<8x384xf32>
    %c200 = arith.constant 200 : index
    %c0_123 = arith.constant 0 : index
    %77 = vector.load %arg7[%c200, %c0_123] : memref<216x384xf32, #tpu.memory_space<vmem>>, vector<8x384xf32>
    tpu.vector_store %arg7[%c200, %c0_123], %76 {strides = array<i32>} : memref<216x384xf32, #tpu.memory_space<vmem>>, vector<8x384xf32>,
    %c0_124 = arith.constant 0 : index
    %c0_125 = arith.constant 0 : index
    %c0_126 = arith.constant 0 : index
    %c50_127 = arith.constant 50 : index
    %78 = vector.load %arg4[%c0_124, %c0_125, %c0_126, %c50_127] : memref<1x1x8x434xf32, #tpu.memory_space<vmem>>, vector<1x1x8x384xf32>
    %79 = vector.shape_cast %78 : vector<1x1x8x384xf32> to vector<8x384xf32>
    %c208 = arith.constant 208 : index
    %c0_128 = arith.constant 0 : index
    %80 = vector.load %arg7[%c208, %c0_128] : memref<216x384xf32, #tpu.memory_space<vmem>>, vector<8x384xf32>
    tpu.vector_store %arg7[%c208, %c0_128], %79 {strides = array<i32>} : memref<216x384xf32, #tpu.memory_space<vmem>>, vector<8x384xf32>,
    %c0_129 = arith.constant 0 : index
    %c0_130 = arith.constant 0 : index
    %81 = vector.load %arg5[%c0_129, %c0_130] : memref<16x216xf32, #tpu.memory_space<vmem>>, vector<16x216xf32>
    %c0_131 = arith.constant 0 : index
    %c0_132 = arith.constant 0 : index
    %82 = vector.load %arg7[%c0_131, %c0_132] : memref<216x384xf32, #tpu.memory_space<vmem>>, vector<216x384xf32>
    %cst = arith.constant dense<0.000000e+00> : vector<16x384xf32>
    %83 = tpu.matmul %81, %82, %cst {dimension_numbers = #tpu.dot_dimension_numbers<[1], [0], [0], [1], [0, 0, 1, 1], [], []>} : vector<16x216xf32>, vector<216x384xf32>, vector<16x384xf32> -> vector<16x384xf32>
    %c0_133 = arith.constant 0 : index
    %c0_134 = arith.constant 0 : index
    %84 = vector.load %arg8[%c0_133, %c0_134] : memref<16x384xf32, #tpu.memory_space<vmem>>, vector<16x384xf32>
    tpu.vector_store %arg8[%c0_133, %c0_134], %83 {strides = array<i32>} : memref<16x384xf32, #tpu.memory_space<vmem>>, vector<16x384xf32>,
    %c8_135 = arith.constant 8 : index
    %c0_136 = arith.constant 0 : index
    %85 = vector.load %arg5[%c8_135, %c0_136] : memref<16x216xf32, #tpu.memory_space<vmem>>, vector<8x72xf32>
    %c0_137 = arith.constant 0 : index
    %c192_138 = arith.constant 192 : index
    %86 = vector.load %arg7[%c0_137, %c192_138] : memref<216x384xf32, #tpu.memory_space<vmem>>, vector<72x24xf32>
    %cst_139 = arith.constant dense<0.000000e+00> : vector<8x24xf32>
    %87 = tpu.matmul %85, %86, %cst_139 {dimension_numbers = #tpu.dot_dimension_numbers<[1], [0], [0], [1], [0, 0, 1, 1], [], []>} : vector<8x72xf32>, vector<72x24xf32>, vector<8x24xf32> -> vector<8x24xf32>
    %c8_140 = arith.constant 8 : index
    %c192_141 = arith.constant 192 : index
    %88 = vector.load %arg8[%c8_140, %c192_141] : memref<16x384xf32, #tpu.memory_space<vmem>>, vector<8x24xf32>
    %89 = arith.subf %88, %87 : vector<8x24xf32>
    %c8_142 = arith.constant 8 : index
    %c192_143 = arith.constant 192 : index
    %90 = vector.load %arg8[%c8_142, %c192_143] : memref<16x384xf32, #tpu.memory_space<vmem>>, vector<8x24xf32>
    tpu.vector_store %arg8[%c8_142, %c192_143], %89 {strides = array<i32>} : memref<16x384xf32, #tpu.memory_space<vmem>>, vector<8x24xf32>,
    %c8_144 = arith.constant 8 : index
    %c144_145 = arith.constant 144 : index
    %91 = vector.load %arg5[%c8_144, %c144_145] : memref<16x216xf32, #tpu.memory_space<vmem>>, vector<8x72xf32>
    %c144_146 = arith.constant 144 : index
    %c168_147 = arith.constant 168 : index
    %92 = vector.load %arg7[%c144_146, %c168_147] : memref<216x384xf32, #tpu.memory_space<vmem>>, vector<72x24xf32>
    %cst_148 = arith.constant dense<0.000000e+00> : vector<8x24xf32>
    %93 = tpu.matmul %91, %92, %cst_148 {dimension_numbers = #tpu.dot_dimension_numbers<[1], [0], [0], [1], [0, 0, 1, 1], [], []>} : vector<8x72xf32>, vector<72x24xf32>, vector<8x24xf32> -> vector<8x24xf32>
    %c8_149 = arith.constant 8 : index
    %c168_150 = arith.constant 168 : index
    %94 = vector.load %arg8[%c8_149, %c168_150] : memref<16x384xf32, #tpu.memory_space<vmem>>, vector<8x24xf32>
    %95 = arith.subf %94, %93 : vector<8x24xf32>
    %c8_151 = arith.constant 8 : index
    %c168_152 = arith.constant 168 : index
    %96 = vector.load %arg8[%c8_151, %c168_152] : memref<16x384xf32, #tpu.memory_space<vmem>>, vector<8x24xf32>
    tpu.vector_store %arg8[%c8_151, %c168_152], %95 {strides = array<i32>} : memref<16x384xf32, #tpu.memory_space<vmem>>, vector<8x24xf32>,
    %c0_153 = arith.constant 0 : index
    %c0_154 = arith.constant 0 : index
    %97 = vector.load %arg8[%c0_153, %c0_154] : memref<16x384xf32, #tpu.memory_space<vmem>>, vector<8x384xf32>
    %cst_155 = arith.constant 0.000000e+00 : f32
    %98 = vector.broadcast %cst_155 : f32 to vector<8x384xf32>
    %99 = arith.cmpf oge, %97, %98 : vector<8x384xf32>
    %cst_156 = arith.constant 0.00999999977 : f32
    %100 = vector.broadcast %cst_156 : f32 to vector<8x384xf32>
    %101 = arith.mulf %100, %97 : vector<8x384xf32>
    %102 = arith.select %99, %97, %101 : vector<8x384xi1>, vector<8x384xf32>
    %c8_157 = arith.constant 8 : index
    %c0_158 = arith.constant 0 : index
    %103 = vector.load %arg8[%c8_157, %c0_158] : memref<16x384xf32, #tpu.memory_space<vmem>>, vector<8x384xf32>
    %cst_159 = arith.constant 0.000000e+00 : f32
    %104 = vector.broadcast %cst_159 : f32 to vector<8x384xf32>
    %105 = arith.cmpf oge, %103, %104 : vector<8x384xf32>
    %cst_160 = arith.constant 0.00999999977 : f32
    %106 = vector.broadcast %cst_160 : f32 to vector<8x384xf32>
    %107 = arith.mulf %106, %103 : vector<8x384xf32>
    %108 = arith.select %105, %103, %107 : vector<8x384xi1>, vector<8x384xf32>
    %109 = arith.addf %102, %108 : vector<8x384xf32>
    %c0_161 = arith.constant 0 : index
    %c0_162 = arith.constant 0 : index
    %c0_163 = arith.constant 0 : index
    %c0_164 = arith.constant 0 : index
    %110 = vector.load %arg6[%c0_161, %c0_162, %c0_163, %c0_164] : memref<1x1x8x384xf32, #tpu.memory_space<vmem>>, vector<1x1x8x384xf32>
    %111 = vector.shape_cast %110 : vector<1x1x8x384xf32> to vector<8x384xf32>
    %112 = vector.shape_cast %109 : vector<8x384xf32> to vector<1x1x8x384xf32>
    tpu.vector_store %arg6[%c0_161, %c0_162, %c0_163, %c0_164], %112 {strides = array<i32>} : memref<1x1x8x384xf32, #tpu.memory_space<vmem>>, vector<1x1x8x384xf32>,
    return
  }
  func.func @transform_0(%arg0: i32, %arg1: i32) -> (i32, i32, i32, i32) {
    %c0_i32 = arith.constant 0 : i32
    %0 = arith.addi %arg1, %c0_i32 : i32
    %c0_i32_0 = arith.constant 0 : i32
    %c0_i32_1 = arith.constant 0 : i32
    %c0_i32_2 = arith.constant 0 : i32
    return %arg0, %0, %c0_i32_0, %c0_i32_1 : i32, i32, i32, i32
  }
  func.func @transform_1(%arg0: i32, %arg1: i32) -> (i32, i32, i32, i32) {
    %c1_i32 = arith.constant 1 : i32
    %0 = arith.addi %arg1, %c1_i32 : i32
    %c0_i32 = arith.constant 0 : i32
    %c0_i32_0 = arith.constant 0 : i32
    %c0_i32_1 = arith.constant 0 : i32
    return %arg0, %0, %c0_i32, %c0_i32_0 : i32, i32, i32, i32
  }
  func.func @transform_2(%arg0: i32, %arg1: i32) -> (i32, i32, i32, i32) {
    %c2_i32 = arith.constant 2 : i32
    %0 = arith.addi %arg1, %c2_i32 : i32
    %c0_i32 = arith.constant 0 : i32
    %c0_i32_0 = arith.constant 0 : i32
    %c0_i32_1 = arith.constant 0 : i32
    return %arg0, %0, %c0_i32, %c0_i32_0 : i32, i32, i32, i32
  }
  func.func @transform_3(%arg0: i32, %arg1: i32) -> (i32, i32) {
    %c0_i32 = arith.constant 0 : i32
    %c0_i32_0 = arith.constant 0 : i32
    %c0_i32_1 = arith.constant 0 : i32
    return %c0_i32, %c0_i32_0 : i32, i32
  }
  func.func @transform_4(%arg0: i32, %arg1: i32) -> (i32, i32, i32, i32) {
    %c0_i32 = arith.constant 0 : i32
    %c0_i32_0 = arith.constant 0 : i32
    %c0_i32_1 = arith.constant 0 : i32
    return %arg0, %arg1, %c0_i32, %c0_i32_0 : i32, i32, i32, i32
  }
}

</mosaic_0001>

<bundles_post_ra>
// kernel: tpu_custom_call.1
= control target key start
LH: loop header
LB: loop body
LE: loop exit
PB: predicated region body
PF: predicated region fallthrough
CT: control target
= control target key end

     0   :  { %s3200_s0 = inlined_call_operand.hbm [shape: f32[2,10,8,434], index: 0, kind: input, shape index: {}]   ;;  %s3201_s1 = inlined_call_operand.hbm [shape: f32[2,10,8,434], index: 1, kind: input, shape index: {}]   ;;  %s3202_s2 = inlined_call_operand.hbm [shape: f32[2,10,8,434], index: 2, kind: input, shape index: {}]   ;;  %s3203_s3 = inlined_call_operand.hbm [shape: f32[16,216], index: 3, kind: input, shape index: {}]   ;;  %s3204_s4 = inlined_call_operand.hbm [shape: f32[2,8,8,384], index: 4, kind: output, shape index: {}]  }
   0x1   :  { %3233 = sst [smem:[#allocation26_spill]] %s3200_s0 }
   0x2   :  { %3234 = sst [smem:[#allocation27_spill]] %s3201_s1 }
   0x3   :  { %3235 = sst [smem:[#allocation28_spill]] %s3202_s2 }
   0x4   :  { %3236 = sst [smem:[#allocation29_spill]] %s3203_s3 }
   0x5   :  { %3237 = sst [smem:[#allocation30_spill]] %s3204_s4 }
   0x6   :  { %9 = vsyncpa [#allocation5], 0 }
   0x7   :  { %11 = vsyncpa [#allocation5 + $0x1], 0 }
   0x8   :  { %12 = vsyncpa [#allocation8], 0 }
   0x9   :  { %14 = vsyncpa [#allocation8 + $0x1], 0 }
   0xa   :  { %15 = vsyncpa [#allocation11], 0 }
   0xb   :  { %16 = vsyncpa [#allocation6], 0 }
   0xc   :  { %18 = vsyncpa [#allocation6 + $0x1], 0  ;;  %s2330_s15 = smov 0   ;;  %s2332_s16 = smov 0  }
   0xd   :  { %s2334_s17 = smov 0   ;;  %s2336_s18 = smov 0  }
   0xe   :  { %s2338_s19 = smov 0   ;;  %s2340_s20 = smov 0  }
   0xf   :  { %s2342_s21 = smov 0   ;;  %s2344_s22 = smov 0  }
  0x10   :  { %s2346_s23 = smov 0   ;;  %s2348_s24 = smov 0  }
  0x11   :  { %s2350_s25 = smov 0   ;;  %s2352_s26 = smov 0  }
  0x12   :  { %s2354_s27 = smov 0   ;;  %s2356_s28 = smov 0  }
  0x13 LB: > { %3238 = sst [smem:[#allocation18_spill]] %s2252_s19  ;;  %s2401_s29 = sadd.s32 4294967295, %s2288_s28   ;;  %s2288_s28 = sphi %s2356_s28, %s24_s28   ;;  %s2284_s27 = sphi %s2354_s27, %s3292_s27   ;;  %s2280_s26 = sphi %s2352_s26, %s3302_s26   ;;  %s2276_s25 = sphi %s2350_s25, %s3301_s25   ;;  %s2272_s24 = sphi %s2348_s24, %s3289_s24   ;;  %s2268_s23 = sphi %s2346_s23, %s3300_s23   ;;  %s2264_s22 = sphi %s2344_s22, %s3299_s22   ;;  %s2260_s21 = sphi %s2342_s21, %s3298_s21   ;;  %s2256_s20 = sphi %s2340_s20, %s3297_s20   ;;  %s2252_s19 = sphi %s2338_s19, %s3296_s19   ;;  %s2248_s18 = sphi %s2336_s18, %s3288_s18   ;;  %s2244_s17 = sphi %s2334_s17, %s3295_s17   ;;  %s2240_s16 = sphi %s2332_s16, %s3294_s16   ;;  %s2236_s15 = sphi %s2330_s15, %s3293_s15  }
  0x14   : > { %3239 = sst [smem:[#allocation19_spill]] %s2272_s24  ;;  %s33_s30 = sadd.s32 1, %s2280_s26 }
  0x15   : > { %3240 = sst [smem:[#allocation20_spill]] %s2276_s25  ;;  %p34_p0 = scmp.ge.s32.totalorder %s33_s30, 8 }
  0x16   : > { %3241 = sst [smem:[#allocation21_spill]] %s2280_s26  ;;  %s36_s5 = sadd.s32 1, %s2284_s27 }
  0x17   : > { %3242 = sst [smem:[#allocation22_spill]] %s2284_s27  ;;  %p53_p1 = scmp.eq.s32.totalorder %s2288_s28, 0 }
  0x18   : > { %p3212_p2 = scmp.eq.s32.totalorder %s2401_s29, 0  ;;  %s3304_s5 = smov (!%p34_p0, %s36_s5), %s2284_s27 }
  0x19   : > { %s2407_s6 = scalar_select %p34_p0, 0, %s33_s30  }
  0x1a   : > { %p38_p3 = scmp.ge.s32.totalorder %s3304_s5, 2  ;;  %s75_s10 = sadd.s32 1, %s2256_s20 }
  0x1b   : > { %3243 = sst [smem:[#allocation23_spill]] %s2407_s6  ;;  %s41_s7 = ssub.s32 %s2280_s26, %s2407_s6 }
  0x1c   : > { %s69_s8 = sadd.s32 1, %s2407_s6  ;;  %p82_p4 = scmp.ne.s32.totalorder %s2256_s20, %s2252_s19 }
  0x1d   : > { %s71_s9 = ssub.s32 %s33_s30, %s69_s8  ;;  %s3306_s5 = smov (%p38_p3, %s3304_s5), 0 }
  0x1e   : > { %3244 = sst [smem:[#allocation24_spill]] %s3306_s5  ;;  %p2420_p5 = por %p82_p4, %p53_p1 }
  0x1f   : > { %p88_p6 = scmp.ne.s32.totalorder %s2252_s19, %s2248_s18  ;;  %s40_s12 = ssub.s32 %s2284_s27, %s3306_s5 }
  0x20   : > { %s98_s13 = sadd.s32 2, %s2280_s26  ;;  %s2429_s14 = sor.u32 %s41_s7, %s40_s12 }
  0x21   : > { %s72_s30 = sor.u32 %s71_s9, %s40_s12  ;;  %p2433_p8 = por %p88_p6, %p3212_p2 }
  0x22   : > { %p73_p7 = scmp.eq.s32.totalorder %s72_s30, 0  ;;  %s99_s4 = sadd.s32 2, %s2407_s6 }
  0x23   : > { %s3246_s8 = scalar_select %p2433_p8, 1, 0 }
  0x24   : > { %s2439_s25 = scalar_select %p73_p7, %s2256_s20, %s75_s10  }
  0x25   : > { %3247 = sst [smem:[#allocation25_spill]] %s3246_s8  ;;  %s101_s24 = ssub.s32 %s98_s13, %s99_s4 }
  0x26   : > { %s102_s2 = sor.u32 %s101_s24, %s40_s12  ;;  %p1625_p9 = scmp.lt.s32.totalorder %s2288_s28, 16 }
  0x27   : > { %p2442_p10 = scmp.eq.s32.totalorder %s102_s2, 0  ;;  %s1566_s7 = sshll.u32 %s2280_s26, 2 }
  0x28   : > { %s1590_s9 = smul.u32 40, %s2284_s27  ;;  %s227_s30 = sand.u32 1, %s2288_s28  }
  0x29   : > { %s229_s5 = sand.u32 1, %s2256_s20   ;;  %s3249_s1 = sld [smem:[#allocation27_spill]] }
  0x2a   : > { %s214_s19 = sadd.s32 %s1590_s9, %s1566_s7  ;;  %s1568_s8 = sshll.u32 %s229_s5, 5 }
  0x2b   : > { %s2450_s6 = sshll.u32 %s214_s19, 3  ;;  %s231_s12 = scalar_lea.vmem [#allocation7], %s1568_s8 }
  0x2c   : > { %s243_s2 = sshll.u32 %s231_s12, 4  ;;  %p1614_p11 = pnand %p1625_p9, %p2420_p5  ;;  %s244_s2 = int_to_ptr.vmem [resolvable:$true] %s243_s2 }
  0x2d   : > { %s2460_s7 = scalar_lea.sflag [#allocation8], %s227_s30  ;;  %p1562_p12 = scmp.ge.s32.totalorder %s2288_s28, 1 }
  0x2e   : > { %p178_p13 = scmp.lt.s32.totalorder %s2288_s28, 17  ;;  %s3250_s3 = sld [smem:[#allocation29_spill]] }
  0x2f   : > { %s1455_s10 = scalar_lea.hbm %s3249_s1, %s2450_s6  ;;  %s2291_s30 = smov 256  }
  0x30   : > { %s1456_s13 = scalar_lea.hbm %s1455_s10, 32  ;;  %p2468_p0 = pnand %p1562_p12, %p178_p13 }
  0x31   : > { %s241_s26 = sshll.u32 %s1456_s13, 4  ;;  %s2292_s4 = smov 16   ;;  %s242_s26 = int_to_ptr.hbm [resolvable:$true] %s241_s26 }
  0x32   : > { %1616 = dma.hbm_to_vmem [thread:$0]  (!%p1614_p11), %s242_s26, 512, %s244_s2, %s2460_s7  }
  0x33   : > { %s2290_s26 = smov [#allocation10]   ;;  %p1606_p3 = pneg %p2468_p0 }
  0x34   : > { %s189_s11 = sshll.u32 %s3250_s3, 4  ;;  %s191_s9 = sshll.u32 %s2290_s26, 4  ;;  %s190_s11 = int_to_ptr.hbm [resolvable:$true] %s189_s11  ;;  %s192_s9 = int_to_ptr.vmem [resolvable:$true] %s191_s9 }
  0x35   : > { %p1607_p4 = pnand %p1606_p3, %p3212_p2  ;;  %s1561_s24 = sadd.s32 4294967294, %s2288_s28  }
  0x36   : > { %p43_p5 = scmp.eq.s32.totalorder %s2429_s14, 0  ;;  %s45_s10 = sadd.s32 1, %s2268_s23 }
  0x37   : > { %1609 = dma.hbm_to_vmem [thread:$0]  (!%p1607_p4), %s190_s11, 512, %s192_s9, [#allocation11], %s2291_s30, %s2291_s30, %s2292_s4  }
  0x38   : > { %p52_p6 = scmp.ne.s32.totalorder %s2268_s23, %s2264_s22  ;;  %p58_p7 = scmp.ne.s32.totalorder %s2264_s22, %s2260_s21 }
  0x39   : > { %s2484_s12 = scalar_select %p43_p5, %s2268_s23, %s45_s10  }
  0x3a   : > { %p2488_p11 = por %p53_p1, %p52_p6  ;;  %p2494_p12 = por %p3212_p2, %p58_p7 }
  0x3b   : > { %p165_p13 = scmp.eq.s32.totalorder %s2401_s29, 15  ;;  %p171_p3 = scmp.eq.s32.totalorder %s1561_s24, 15 }
  0x3c   : > { %s205_s14 = sand.u32 1, %s2268_s23   ;;  %s3254_s0 = sld [smem:[#allocation26_spill]] }
  0x3d   : > { %p2504_p4 = por %p165_p13, %p52_p6  ;;  %p2508_p5 = por %p171_p3, %p58_p7 }
  0x3e   : > { %s1565_s30 = sshll.u32 %s205_s14, 5  ;;  %p1611_p2 = pnand %p1625_p9, %p2488_p11 }
  0x3f   : > { %s3256_s9 = scalar_select %p2508_p5, 1, 0 }
  0x40   : > { %s209_s24 = scalar_lea.vmem [#allocation4], %s1565_s30  ;;  %s206_s19 = scalar_lea.sflag [#allocation5], %s205_s14 }
  0x41   : > { %s220_s10 = sshll.u32 %s209_s24, 4  ;;  %s105_s5 = sadd.s32 1, %s2244_s17  ;;  %s221_s10 = int_to_ptr.vmem [resolvable:$true] %s220_s10 }
  0x42   : > { %s216_s11 = scalar_lea.hbm %s3254_s0, %s2450_s6  ;;  %p112_p6 = scmp.ne.s32.totalorder %s2244_s17, %s2240_s16 }
  0x43   : > { %s218_s4 = sshll.u32 %s216_s11, 4  ;;  %p118_p7 = scmp.ne.s32.totalorder %s2240_s16, %s2236_s15  ;;  %s219_s4 = int_to_ptr.hbm [resolvable:$true] %s218_s4 }
  0x44   : > { %1613 = dma.hbm_to_vmem [thread:$0]  (!%p1611_p2), %s219_s4, 512, %s221_s10, %s206_s19  }
  0x45   : > { %s2520_s0 = scalar_select %p2442_p10, %s2244_s17, %s105_s5  }
  0x46   : > { %s252_s1 = sand.u32 1, %s2244_s17   ;;  %s3257_s27 = sld [smem:[#allocation28_spill]] }
  0x47   : > { %p114_p13 = por %p112_p6, %p53_p1  ;;  %p3258_p3 = scmp.eq.s32.totalorder %s2401_s29, 0 }
  0x48   : > { %s1571_s14 = sshll.u32 %s252_s1, 5  ;;  %s2545_s3 = sand.u32 (!%p2468_p0), 1, %s2264_s22  }
  0x49   : > { %p2535_p5 = por %p118_p7, %p3258_p3  ;;  %s254_s24 = scalar_lea.vmem [#allocation9], %s1571_s14 }
  0x4a   : > { %s266_s10 = sshll.u32 %s254_s24, 4  ;;  %p1617_p2 = pnand %p1625_p9, %p114_p13  ;;  %s267_s10 = int_to_ptr.vmem [resolvable:$true] %s266_s10 }
  0x4b   : > { %275 = sbr.rel (%p2468_p0) target bundleno = 657 (0x291), region = 36  ;;  %s1575_s15 = sshll.u32 (!%p2468_p0), %s2545_s3, 5 }
  0x4c   : > { %s1464_s30 = scalar_lea.hbm %s3257_s27, %s2450_s6  ;;  %s278_s1 = scalar_lea.sflag (!%p2468_p0), [#allocation5], %s2545_s3 }
  0x4d   : > { %s1465_s4 = scalar_lea.hbm %s1464_s30, 64  ;;  %s2549_s27 = scalar_lea.vmem (!%p2468_p0), [#allocation4], %s1575_s15 }
  0x4e   : > { %s264_s18 = sshll.u32 %s1465_s4, 4  ;;  %s265_s18 = int_to_ptr.hbm [resolvable:$true] %s264_s18 }
  0x4f   : > { %1619 = dma.hbm_to_vmem [thread:$0]  (!%p1617_p2), %s265_s18, 512, %s267_s10, %s2460_s7  }
  0x50   : > { %2215 = dma.done.wait (%p2494_p12), %s278_s1, 512  }
  0x51   : > { %2217 = vsyncadd (%p2494_p12), %s278_s1, 4294966784  ;;  %s3260_s6 = sld [smem:[#allocation18_spill]]  ;;  %s287_s8 = sand.u32 1, %s2401_s29  }
  0x52   : > { %s288_s11 = scalar_lea.sflag [#allocation8], %s287_s8 }
  0x57   : > { %s289_s19 = sand.u32 1, %s3260_s6  }
  0x58   : > { %s1576_s5 = sshll.u32 %s289_s19, 5 }
  0x59   : > { %s2557_s30 = scalar_lea.vmem [#allocation7], %s1576_s5 }
  0x5a   : > { %2219 = dma.done.wait (%p2433_p8), %s288_s11, 512  }
  0x5b   : > { %2221 = vsyncadd (%p2433_p8), %s288_s11, 4294966784  ;;  %s299_s14 = sand.u32 1, %s2240_s16  }
  0x5c   : > { %s1577_s4 = sshll.u32 %s299_s14, 5 }
  0x5d   : > { %s2564_s13 = scalar_lea.vmem [#allocation9], %s1577_s4 }
  0x5e   : > { %2223 = dma.done.wait (%p2535_p5), %s288_s11, 512  }
  0x5f   : > { %2225 = vsyncadd (%p2535_p5), %s288_s11, 4294966784  ;;  %p3262_p1 = scmp.eq.s32.totalorder %s2401_s29, 0 }
  0x61   : > { %2227 = dma.done.wait (%p3262_p1), [#allocation11], 512   ;;  %p3263_p9 = pmov %p3262_p1 }
  0x62   : > { %v2575_v0 = vld [vmem:[%s2557_s30] sm:$0xff]  ;;  %v2578_v1 = vld [vmem:[%s2557_s30 + $0x8] sm:$0xff]  ;;  %s2293_s29 = smov 127   ;;  %s2294_s2 = smov 126   ;;  %v410_v6 = vld [vmem:[%s2557_s30 + $0x10] sm:$0xff]  ;;  %vm366_vm0 = vcmask 1039360  }
  0x63   : > { %2229 = vsyncadd (%p3263_p9), [#allocation11], 4294966784  ;;  %v2581_v2 = vld [vmem:[%s2549_s27] sm:$0xff]  ;;  %v1775_v3 = vpack.i.bf16 %v2578_v1, %v2575_v0  ;;  %v2586_v4 = vld [vmem:[%s2549_s27 + $0x8] sm:$0xff]  ;;  %s2295_s18 = smov 80   ;;  %s2296_s24 = smov 79   ;;  %v1830_v19 = vpack.i.bf16 %v410_v6, %v2578_v1 }
  0x64   : > { %v1765_v5 = vpack.i.bf16 %v2586_v4, %v2581_v2  ;;  %v2593_v7 = vld [vmem:[%s2557_s30 + $0x18] sm:$0xff]  ;;  %v378_v8 = vld [vmem:[%s2549_s27 + $0x10] sm:$0xff]  ;;  %v2603_v12 = vld [vmem:[%s2564_s13] sm:$0xff]  ;;  %s2297_s10 = smov 78   ;;  %s2298_s15 = smov 102   ;;  %v1865_v21 = vpack.i.bf16 %v2581_v2, %v410_v6  ;;  %vm392_vm1 = vcmask 1031168  }
  0x65   : > { %1776 = vrot.lane.b32.xlu2 %v1775_v3, %s2293_s29  ;;  %v2597_v9 = vld [vmem:[%s2549_s27 + $0x18] sm:$0xff]  ;;  %v1780_v10 = vpack.i.bf16 %v2593_v7, %v410_v6  ;;  %v2606_v13 = vld [vmem:[%s2564_s13 + $0x8] sm:$0xff]  ;;  %v491_v15 = vld [vmem:[%s2564_s13 + $0x10] sm:$0xff]  ;;  %s2299_s1 = smov 104   ;;  %s2300_s6 = smov 103   ;;  %v1875_v22 = vpack.i.bf16 %v378_v8, %v2586_v4  ;;  %v1910_v23 = vpack.i.bf16 %v2575_v0, %v2603_v12  ;;  %vm784_vm2 = vcmask 646144  }
  0x66   : > { %1766 = vrot.lane.b32.xlu1 %v1765_v5, %s2294_s2  ;;  %1756 = vrot.lane.b32.xlu0 %v1765_v5, %s2293_s29  ;;  %v1770_v11 = vpack.i.bf16 %v2597_v9, %v378_v8  ;;  %v1795_v14 = vpack.i.bf16 %v2606_v13, %v2603_v12  ;;  %v2614_v16 = vld [vmem:[%s2564_s13 + $0x18] sm:$0xff]  ;;  %v1820_v18 = vpack.i.bf16 %v491_v15, %v2606_v13  ;;  %s2301_s7 = smov 112   ;;  %s2302_s8 = smov 64   ;;  %vm810_vm3 = vcmask 637952  }
  0x67   : > { %v1800_v17 = vpack.i.bf16 %v2614_v16, %v491_v15  ;;  %v1850_v20 = vpack.i.bf16 %v2575_v0, %v491_v15  ;;  %v1905_v24 = vpack.i.bf16 %v2614_v16, %v378_v8  ;;  %v2648_v25 = vld [vmem:[#allocation10 + $0x18] sm:$0xff]  ;;  %v2656_v29 = vpack.i.bf16 %v2606_v13, %v2593_v7  ;;  %s2303_s19 = smov 88   ;;  %s2304_s5 = smov 40  }
  0x68   : > { %v2665_v32 = vpack.i.bf16 %v2597_v9, %v491_v15  ;;  %vm758_vm4 = vcmask 654336   ;;  %vm530_vm5 = vcmask 850944   ;;  %vm582_vm6 = vcmask 834560   ;;  %s3284_s14 = sld [smem:[#allocation20_spill]] }
  0x69   : > { %vm556_vm7 = vcmask 842752   ;;  %vm1252_vm8 = vcmask 588800   ;;  %vm1055_vm9 = vcmask 719872   ;;  %vm1282_vm14 = vcmask 720384  }
  0x6a   : > { %vm1361_vm15 = vcmask 523584  }
  0x6d   : > { %1781 = vrot.lane.b32.xlu2 %v1780_v10, %s2293_s29 }
  0x6e   : > { %1771 = vrot.lane.b32.xlu1 %v1770_v11, %s2294_s2  ;;  %1761 = vrot.lane.b32.xlu0 %v1770_v11, %s2293_s29 }
  0x75   : > { %1796 = vrot.lane.b32.xlu2 %v1795_v14, %s2293_s29 }
  0x76   : > { %1791 = vrot.lane.b32.xlu1 %v1780_v10, %s2294_s2  ;;  %1786 = vrot.lane.b32.xlu0 %v1775_v3, %s2294_s2 }
  0x7d   : > { %501 = vrot.lane.b32.xlu2 %v491_v15, %s2294_s2 }
  0x7e   : > { %1806 = vrot.lane.b32.xlu1 %v1795_v14, %s2294_s2  ;;  %1801 = vrot.lane.b32.xlu0 %v1800_v17, %s2293_s29 }
  0x85   : > { %1821 = vrot.lane.b32.xlu2 %v1820_v18, %s2295_s18 }
  0x86   : > { %1816 = vrot.lane.b32.xlu1 %v1820_v18, %s2296_s24  ;;  %1811 = vrot.lane.b32.xlu0 %v1820_v18, %s2297_s10 }
  0x8d   : > { %1836 = vrot.lane.b32.xlu2 %v1775_v3, %s2298_s15 }
  0x8e   : > { %1831 = vrot.lane.b32.xlu1 %v1830_v19, %s2297_s10  ;;  %1826 = vrot.lane.b32.xlu0 %v1795_v14, %s2299_s1 }
  0x95   : > { %1851 = vrot.lane.b32.xlu2 %v1850_v20, %s2299_s1 }
  0x96   : > { %1846 = vrot.lane.b32.xlu1 %v1775_v3, %s2300_s6  ;;  %1841 = vrot.lane.b32.xlu0 %v1830_v19, %s2296_s24 }
  0x9d   : > { %1866 = vrot.lane.b32.xlu2 %v1865_v21, %s2298_s15 }
  0x9e   : > { %1861 = vrot.lane.b32.xlu1 %v1830_v19, %s2299_s1  ;;  %1856 = vrot.lane.b32.xlu0 %v1830_v19, %s2295_s18 }
  0xa5   : > { %1881 = vrot.lane.b32.xlu2 %v1865_v21, %s2300_s6 }
  0xa6   : > { %1876 = vrot.lane.b32.xlu1 %v1875_v22, %s2298_s15  ;;  %1871 = vrot.lane.b32.xlu0 %v1875_v22, %s2297_s10 }
  0xad   : > { %1896 = vrot.lane.b32.xlu2 %v1875_v22, %s2295_s18 }
  0xae   : > { %1891 = vrot.lane.b32.xlu1 %v1875_v22, %s2300_s6  ;;  %1886 = vrot.lane.b32.xlu0 %v1875_v22, %s2296_s24 }
  0xb5   : > { %1911 = vrot.lane.b32.xlu2 %v1910_v23, %s2297_s10 }
  0xb6   : > { %1906 = vrot.lane.b32.xlu1 %v1905_v24, %s2299_s1  ;;  %1901 = vrot.lane.b32.xlu0 %v1765_v5, %s2299_s1 }
  0xbd   : > { %1916 = vrot.lane.b32.xlu2 %v1910_v23, %s2296_s24 }
  0xbe   : > { %1295 = vrot.lane.b32.xlu1 %v2648_v25, %s2301_s7  ;;  %1225 = vrot.lane.b32.xlu0 %v2586_v4, %s2302_s8  ;;  %s1394_s7 = scalar_lea.sflag [#allocation6], %s2545_s3 }
  0xbf   : > { %v1777_v26 = vpop.permute.xlu2 %1776 }
  0xc0   : > { %v1779_v27 = vunpack.i.h.bf16 %v1777_v26  ;;  %v1778_v28 = vunpack.i.l.bf16 %v1777_v26 }
  0xc2   : > { %v2659_v30 = vsel %vm366_vm0, %v1778_v28, %v1779_v27 }
  0xc5   : > { %1931 = vrot.lane.b32.xlu2 %v2665_v32, %s2298_s15 }
  0xc6   : > { %1926 = vrot.lane.b32.xlu1 %v2656_v29, %s2298_s15  ;;  %1921 = vrot.lane.b32.xlu0 %v1910_v23, %s2295_s18 }
  0xc7   : > { %v1782_v31 = vpop.permute.xlu2 %1781 }
  0xc8   : > { %v1784_v33 = vunpack.i.h.bf16 %v1782_v31  ;;  %v1783_v34 = vunpack.i.l.bf16 %v1782_v31 }
  0xca   : > { %v2670_v35 = vsel %vm366_vm0, %v1783_v34, %v1784_v33  ;;  %v2743_v22 = vsel %vm366_vm0, %v1779_v27, %v1783_v34 }
  0xcf   : > { %v2672_v36 = vpop.permute.xlu2 %1796 }
  0xd0   : > { %v1799_v63 = vunpack.i.h.bf16 %v2672_v36 }
  0xd7   : > { %v2674_v37 = vpop.permute.xlu2 %501 }
  0xd8   : > { %v2676_v38 = vpop.permute.xlu1 %1766  ;;  %v2678_v39 = vpop.permute.xlu0 %1756 }
  0xd9   : > { %v1759_v40 = vunpack.i.h.bf16 %v2678_v39  ;;  %v1758_v41 = vunpack.i.l.bf16 %v2678_v39 }
  0xdb   : > { %v2685_v42 = vsel %vm366_vm0, %v1758_v41, %v1759_v40 }
  0xdf   : > { %v2687_v43 = vpop.permute.xlu2 %1821 }
  0xe0   : > { %v2689_v44 = vpop.permute.xlu1 %1771  ;;  %v1762_v45 = vpop.permute.xlu0 %1761  ;;  %v3219_v31 = vunpack.i.h.bf16 %v2687_v43  ;;  %v3230_v33 = vunpack.i.l.bf16 %v2687_v43 }
  0xe1   : > { %v1774_v46 = vunpack.i.h.bf16 %v2689_v44  ;;  %v1773_v47 = vunpack.i.l.bf16 %v2689_v44  ;;  %v1764_v48 = vunpack.i.h.bf16 %v1762_v45  ;;  %v1763_v49 = vunpack.i.l.bf16 %v1762_v45 }
  0xe2   : > { %v1950_v44 = vpack.i.bf16 %v2578_v1, %v2743_v22  ;;  %v1769_v45 = vunpack.i.h.bf16 %v2676_v38 }
  0xe3   : > { %v2694_v50 = vsel %vm392_vm1, %v1773_v47, %v1774_v46  ;;  %v2697_v51 = vsel %vm366_vm0, %v1763_v49, %v1764_v48  ;;  %v912_v46 = vsel %vm758_vm4, %v3230_v33, %v3219_v31 }
  0xe7   : > { %v2699_v52 = vpop.permute.xlu2 %1836 }
  0xe8   : > { %v1792_v53 = vpop.permute.xlu1 %1791  ;;  %v1787_v54 = vpop.permute.xlu0 %1786 }
  0xe9   : > { %v1794_v55 = vunpack.i.h.bf16 %v1792_v53  ;;  %v1793_v56 = vunpack.i.l.bf16 %v1792_v53  ;;  %v1789_v57 = vunpack.i.h.bf16 %v1787_v54  ;;  %v1788_v58 = vunpack.i.l.bf16 %v1787_v54 }
  0xea   : > { %v2777_v54 = vsel %vm366_vm0, %v1759_v40, %v1763_v49 }
  0xeb   : > { %v2702_v59 = vsel %vm392_vm1, %v1789_v57, %v1793_v56  ;;  %v2705_v60 = vsel %vm392_vm1, %v1788_v58, %v1789_v57  ;;  %v2708_v61 = vsel %vm392_vm1, %v1793_v56, %v1794_v55  ;;  %v2782_v55 = vsel %vm392_vm1, %v1769_v45, %v1773_v47 }
  0xec   : > { %v1940_v62 = vpack.i.bf16 %v2702_v59, %v2606_v13  ;;  %v1839_v56 = vunpack.i.h.bf16 %v2699_v52  ;;  %v1838_v57 = vunpack.i.l.bf16 %v2699_v52 }
  0xee   : > { %1941 = vrot.lane.b32.xlu0 %v1940_v62, %s2302_s8 }
  0xef   : > { %v2714_v3 = vpop.permute.xlu2 %1851 }
  0xf0   : > { %v2716_v5 = vpop.permute.xlu1 %1806  ;;  %v1802_v6 = vpop.permute.xlu0 %1801  ;;  %v1853_v48 = vunpack.i.l.bf16 %v2714_v3 }
  0xf1   : > { %v1809_v8 = vunpack.i.h.bf16 %v2716_v5  ;;  %v1804_v10 = vunpack.i.h.bf16 %v1802_v6  ;;  %v1803_v11 = vunpack.i.l.bf16 %v1802_v6 }
  0xf3   : > { %v2722_v14 = vsel %vm366_vm0, %v1799_v63, %v1803_v11  ;;  %v2728_v15 = vsel %vm392_vm1, %v1809_v8, %v2674_v37  ;;  %v2731_v17 = vsel %vm366_vm0, %v1803_v11, %v1804_v10 }
  0xf4   : > { %v1935_v18 = vpack.i.bf16 %v2722_v14, %v2728_v15 }
  0xf6   : > { %1936 = vrot.lane.b32.xlu2 %v1935_v18, %s2302_s8  ;;  %v1960_v18 = vpack.i.bf16 %v2777_v54, %v2782_v55 }
  0xf7   : > { %v2736_v19 = vpop.permute.xlu2 %1866 }
  0xf8   : > { %v2738_v20 = vpop.permute.xlu1 %1816  ;;  %v2740_v21 = vpop.permute.xlu0 %1811  ;;  %v3214_v58 = vunpack.i.l.bf16 %v2736_v19 }
  0xf9   : > { %v3221_v23 = vunpack.i.h.bf16 %v2738_v20  ;;  %v1818_v24 = vunpack.i.l.bf16 %v2738_v20  ;;  %v3222_v26 = vunpack.i.h.bf16 %v2740_v21  ;;  %v1813_v28 = vunpack.i.l.bf16 %v2740_v21 }
  0xfb   : > { %v937_v41 = vsel %vm784_vm2, %v1818_v24, %v3221_v23  ;;  %v962_v27 = vsel %vm810_vm3, %v1813_v28, %v3222_v26 }
  0xfc   : > { %v1945_v34 = vpack.i.bf16 %v937_v41, %v962_v27  ;;  %1136 = vmatpush.msra.mxu3 %v962_v27  ;;  %v658_v27 = vsel %vm582_vm6, %v1838_v57, %v1839_v56 }
  0xfe   : > { %1946 = vrot.lane.b32.xlu1 %v1945_v34, %s2303_s19  ;;  %1951 = vrot.lane.b32.xlu2 %v1950_v44, %s2302_s8  ;;  %v659_v34 = vsel %vm582_vm6, %v1839_v56, %v3214_v58 }
  0xff   : > { %v2772_v53 = vpop.permute.xlu2 %1881  ;;  %1137 = vmatpush.msra.mxu3 %v937_v41 }
 0x100   : > { %v2787_v62 = vpop.permute.xlu1 %1831  ;;  %v1827_v6 = vpop.permute.xlu0 %1826  ;;  %v3218_v44 = vunpack.i.l.bf16 %v2772_v53 }
 0x101   : > { %v3217_v39 = vunpack.i.h.bf16 %v2787_v62  ;;  %v3229_v40 = vunpack.i.l.bf16 %v2787_v62  ;;  %v1829_v49 = vunpack.i.h.bf16 %v1827_v6  ;;  %v1828_v10 = vunpack.i.l.bf16 %v1827_v6  ;;  %1138 = vmatpush.msra.mxu3 %v912_v46 }
 0x103   : > { %v683_v47 = vsel %vm530_vm5, %v1828_v10, %v1829_v49  ;;  %v684_v11 = vsel %vm530_vm5, %v1829_v49, %v1853_v48  ;;  %v887_v52 = vsel %vm810_vm3, %v3229_v40, %v3217_v39 }
 0x104   : > { %1062 = vmatpush.msra.mxu0 %v683_v47  ;;  %1108 = vmatpush.msra.mxu2 %v684_v11  ;;  %v1955_v41 = vpack.i.bf16 %v887_v52, %v912_v46 }
 0x105   : > { %1139 = vmatpush.msra.mxu3 %v887_v52 }
 0x106   : > { %1961 = vrot.lane.b32.xlu1 %v1960_v18, %s2302_s8  ;;  %1956 = vrot.lane.b32.xlu0 %v1955_v41, %s2303_s19 }
 0x107   : > { %v2809_v6 = vpop.permute.xlu2 %1896  ;;  %1063 = vmatpush.msra.mxu0 %v658_v27  ;;  %1109 = vmatpush.msra.mxu2 %v659_v34 }
 0x108   : > { %v3216_v49 = vunpack.i.h.bf16 %v2809_v6  ;;  %v3220_v46 = vunpack.i.l.bf16 %v2809_v6  ;;  %v1847_v57 = vpop.permute.xlu1 %1846  ;;  %v2813_v10 = vpop.permute.xlu0 %1841 }
 0x109   : > { %v1849_v56 = vunpack.i.h.bf16 %v1847_v57  ;;  %v1848_v47 = vunpack.i.l.bf16 %v1847_v57  ;;  %v3215_v11 = vunpack.i.h.bf16 %v2813_v10  ;;  %v3226_v52 = vunpack.i.l.bf16 %v2813_v10 }
 0x10a   : > { %v2827_v41 = vsel %vm758_vm4, %v3220_v46, %v3216_v49  ;;  %v1854_v57 = vunpack.i.h.bf16 %v2714_v3 }
 0x10b   : > { %v862_v18 = vsel %vm784_vm2, %v3226_v52, %v3215_v11  ;;  %v633_v27 = vsel %vm556_vm7, %v1848_v47, %v1849_v56  ;;  %v634_v34 = vsel %vm556_vm7, %v1849_v56, %v3218_v44 }
 0x10c   : > { %1140 = vmatpush.msra.mxu3 %v862_v18  ;;  %1064 = vmatpush.msra.mxu0 %v633_v27 }
 0x10d   : > { %1110 = vmatpush.msra.mxu2 %v634_v34 }
 0x10e   : > { %1306 = vrot.lane.b32.xlu0 %v2827_v41, %s2303_s19 }
 0x10f   : > { %v2836_v58 = vpop.permute.xlu2 %1911 }
 0x110   : > { %v1913_v11 = vunpack.i.l.bf16 %v2836_v58  ;;  %v2839_v49 = vpop.permute.xlu1 %1861  ;;  %v2841_v39 = vpop.permute.xlu0 %1856 }
 0x111   : > { %v3224_v47 = vunpack.i.h.bf16 %v2839_v49  ;;  %v1863_v56 = vunpack.i.l.bf16 %v2839_v49  ;;  %v3223_v27 = vunpack.i.h.bf16 %v2841_v39  ;;  %v3225_v34 = vunpack.i.l.bf16 %v2841_v39 }
 0x112   : > { %v961_v44 = vsel %vm810_vm3, %v1913_v11, %v1813_v28  ;;  %v1869_v28 = vunpack.i.h.bf16 %v2736_v19 }
 0x113   : > { %v608_v31 = vsel %vm530_vm5, %v1854_v57, %v1863_v56  ;;  %1090 = vmatpush.msra.mxu1 %v961_v44  ;;  %v837_v46 = vsel %vm758_vm4, %v3225_v34, %v3223_v27  ;;  %v609_v23 = vsel %vm530_vm5, %v1863_v56, %v3224_v47  ;;  %v1990_v56 = vpack.i.bf16 %v2597_v9, %v2593_v7 }
 0x114   : > { %1065 = vmatpush.msra.mxu0 %v608_v31  ;;  %v1965_v26 = vpack.i.bf16 %v837_v46, %v862_v18  ;;  %1141 = vmatpush.msra.mxu3 %v837_v46  ;;  %v1985_v18 = vpack.i.bf16 %v2581_v2, %v2614_v16 }
 0x115   : > { %1111 = vmatpush.msra.mxu2 %v609_v23 }
 0x116   : > { %1966 = vrot.lane.b32.xlu2 %v1965_v26, %s2303_s19  ;;  %1976 = vrot.lane.b32.xlu0 %v2656_v29, %s2300_s6 }
 0x117   : > { %v2863_v44 = vpop.permute.xlu2 %1916 }
 0x118   : > { %v1918_v11 = vunpack.i.l.bf16 %v2863_v44  ;;  %v2866_v57 = vpop.permute.xlu1 %1876  ;;  %v2868_v27 = vpop.permute.xlu0 %1871 }
 0x119   : > { %v1879_v31 = vunpack.i.h.bf16 %v2866_v57  ;;  %v1878_v46 = vunpack.i.l.bf16 %v2866_v57  ;;  %v3227_v23 = vunpack.i.h.bf16 %v2868_v27  ;;  %v3228_v26 = vunpack.i.l.bf16 %v2868_v27 }
 0x11a   : > { %v936_v29 = vsel %vm784_vm2, %v1918_v11, %v1818_v24  ;;  %v1884_v24 = vunpack.i.h.bf16 %v2772_v53 }
 0x11b   : > { %v583_v47 = vsel %vm582_vm6, %v1869_v28, %v1878_v46  ;;  %1091 = vmatpush.msra.mxu1 %v936_v29  ;;  %v812_v57 = vsel %vm810_vm3, %v3228_v26, %v3227_v23  ;;  %v584_v34 = vsel %vm582_vm6, %v1878_v46, %v1879_v31 }
 0x11c   : > { %1066 = vmatpush.msra.mxu0 %v583_v47  ;;  %1142 = vmatpush.msra.mxu3 %v812_v57 }
 0x11d   : > { %1112 = vmatpush.msra.mxu2 %v584_v34 }
 0x11e   : > { %1986 = vrot.lane.b32.xlu2 %v1985_v18, %s2297_s10  ;;  %1991 = vrot.lane.b32.xlu0 %v1990_v56, %s2299_s1 }
 0x120   : > { %v2891_v11 = vpop.permute.xlu1 %1891  ;;  %v2893_v28 = vpop.permute.xlu0 %1886 }
 0x121   : > { %v1894_v29 = vunpack.i.h.bf16 %v2891_v11  ;;  %v1893_v52 = vunpack.i.l.bf16 %v2891_v11  ;;  %v3231_v23 = vunpack.i.h.bf16 %v2893_v28  ;;  %v3232_v47 = vunpack.i.l.bf16 %v2893_v28  ;;  %v346_v11 = vld [vmem:[%s2549_s27 + $0x10] sm:$0xff]  ;;  %s1591_s27 = smul.u32 24, %s2545_s3 }
 0x123   : > { %v557_v34 = vsel %vm556_vm7, %v1884_v24, %v1893_v52  ;;  %v786_v46 = vsel %vm784_vm2, %v3232_v47, %v3231_v23  ;;  %v558_v26 = vsel %vm556_vm7, %v1893_v52, %v1894_v29  ;;  %v1808_v24 = vunpack.i.l.bf16 %v2716_v5  ;;  %s3126_s11 = scalar_lea.vmem [#allocation12], %s1591_s27 }
 0x124   : > { %1067 = vmatpush.msra.mxu0 %v557_v34  ;;  %v1970_v40 = vpack.i.bf16 %v786_v46, %v812_v57  ;;  %1143 = vmatpush.msra.mxu3 %v786_v46  ;;  %s1409_s1 = sshll.u32 %s3126_s11, 4  ;;  %s1410_s1 = int_to_ptr.vmem [resolvable:$true] %s1409_s1 }
 0x125   : > { %1113 = vmatpush.msra.mxu2 %v558_v26  ;;  %v1798_v26 = vunpack.i.l.bf16 %v2672_v36 }
 0x126   : > { %2001 = vrot.lane.b32.xlu2 %v1985_v18, %s2295_s18  ;;  %1971 = vrot.lane.b32.xlu1 %v1970_v40, %s2303_s19 }
 0x127   : > { %2006 = vrot.lane.b32.xlu0 %v1990_v56, %s2297_s10  ;;  %1144 = vmatpush.msra.mxu3 %v2827_v41  ;;  %v505_v56 = vsel %vm392_vm1, %v1808_v24, %v1809_v8  ;;  %v480_v3 = vsel %vm366_vm0, %v1798_v26, %v1799_v63  ;;  %v3264_v63 = vunpack.i.l.bf16 %v2687_v43  ;;  %s3285_s10 = sld [smem:[#allocation30_spill]] }
 0x128   : > { %v2913_v33 = vpop.permute.xlu1 %1906  ;;  %v1902_v23 = vpop.permute.xlu0 %1901 }
 0x129   : > { %v1909_v47 = vunpack.i.h.bf16 %v2913_v33  ;;  %v1908_v52 = vunpack.i.l.bf16 %v2913_v33  ;;  %v1904_v57 = vunpack.i.h.bf16 %v1902_v23  ;;  %v1903_v34 = vunpack.i.l.bf16 %v1902_v23  ;;  %v2930_v23 = vpop.permute.xlu2 %1931  ;;  %v404_v33 = vld [vmem:[%s2557_s30 + $0x10] sm:$0xff]  ;;  %s3283_s30 = sld [smem:[#allocation19_spill]] }
 0x12b   : > { %v531_v46 = vsel %vm530_vm5, %v1903_v34, %v1904_v57  ;;  %v532_v40 = vsel %vm530_vm5, %v1904_v57, %v1908_v52  ;;  %v2925_v41 = vsel %vm530_vm5, %v1853_v48, %v1909_v47  ;;  %v1934_v34 = vunpack.i.h.bf16 %v2930_v23 }
 0x12c   : > { %1068 = vmatpush.msra.mxu0 %v531_v46  ;;  %1114 = vmatpush.msra.mxu2 %v532_v40 }
 0x12d   : > { %v2948_v8 = vsel %vm582_vm6, %v1879_v31, %v1934_v34 }
 0x12e   : > { %1069 = vmatpush.msra.mxu0 %v505_v56  ;;  %1115 = vmatpush.msra.mxu2 %v2728_v15  ;;  %v3266_v15 = vunpack.i.l.bf16 %v2813_v10 }
 0x12f   : > { %859 = vrot.lane.b32.xlu2 %v2593_v7, %s2296_s24  ;;  %1981 = vrot.lane.b32.xlu1 %v2665_v32, %s2300_s6  ;;  %v1768_v32 = vunpack.i.l.bf16 %v2676_v38  ;;  %s1592_s4 = smul.u32 3, %s3283_s30  ;;  %s2150_s30 = scalar_lea.hbm %s3285_s10, 384 }
 0x130   : > { %503 = vrot.lane.b32.xlu0 %v2614_v16, %s2294_s2  ;;  %1070 = vmatpush.msra.mxu0 %v480_v3  ;;  %v2943_v5 = vpop.permute.xlu0 %1225 }
 0x131   : > { %1116 = vmatpush.msra.mxu2 %v2722_v14 }
 0x132   : > { %1071 = vmatpush.msra.mxu0 %v2603_v12 }
 0x133   : > { %1117 = vmatpush.msra.mxu2 %v2606_v13  ;;  %v1914_v13 = vunpack.i.h.bf16 %v2836_v58 }
 0x134   : > { %1072 = vmatpush.msra.mxu0 %v2705_v60  ;;  %v2964_v60 = vpop.permute.xlu1 %1295 }
 0x135   : > { %1118 = vmatpush.msra.mxu2 %v2702_v59 }
 0x136   : > { %1073 = vmatpush.msra.mxu0 %v2659_v30  ;;  %v1919_v30 = vunpack.i.h.bf16 %v2863_v44  ;;  %v3010_v44 = vld [vmem:[#allocation10 + $0x10] sm:$0xff] }
 0x137   : > { %834 = vrot.lane.b32.xlu2 %v2593_v7, %s2295_s18  ;;  %1119 = vmatpush.msra.mxu2 %v2743_v22  ;;  %v393_v7 = vsel %vm392_vm1, %v1768_v32, %v1769_v45 }
 0x138   : > { %1996 = vrot.lane.b32.xlu1 %v1985_v18, %s2296_s24  ;;  %782 = vrot.lane.b32.xlu0 %v2597_v9, %s2296_s24  ;;  %v1922_v36 = vpop.permute.xlu0 %1921  ;;  %v861_v22 = vsel %vm784_vm2, %v1919_v30, %v3266_v15 }
 0x139   : > { %1074 = vmatpush.msra.mxu0 %v2575_v0  ;;  %1120 = vmatpush.msra.mxu2 %v2578_v1  ;;  %v1923_v59 = vunpack.i.l.bf16 %v1922_v36  ;;  %v1924_v0 = vunpack.i.h.bf16 %v1922_v36  ;;  %v3265_v1 = vunpack.i.l.bf16 %v2787_v62 }
 0x13b   : > { %1075 = vmatpush.msra.mxu0 %v393_v7  ;;  %1121 = vmatpush.msra.mxu2 %v2782_v55  ;;  %v911_v14 = vsel %vm758_vm4, %v1923_v59, %v3264_v63  ;;  %v886_v38 = vsel %vm810_vm3, %v1914_v13, %v3265_v1  ;;  %v3268_v7 = vunpack.i.l.bf16 %v2868_v27 }
 0x13c   : > { %1092 = vmatpush.msra.mxu1 %v911_v14  ;;  %v2993_v48 = vpop.permute.xlu1 %1926 }
 0x13d   : > { %1076 = vmatpush.msra.mxu0 %v2685_v42  ;;  %1122 = vmatpush.msra.mxu2 %v2777_v54  ;;  %v3267_v42 = vunpack.i.l.bf16 %v2841_v39  ;;  %v1929_v54 = vunpack.i.h.bf16 %v2993_v48 }
 0x13e   : > { %1093 = vmatpush.msra.mxu1 %v886_v38 }
 0x13f   : > { %731 = vrot.lane.b32.xlu2 %v2614_v16, %s2298_s15  ;;  %1077 = vmatpush.msra.mxu0 %v2581_v2  ;;  %v836_v45 = vsel %vm758_vm4, %v1924_v0, %v3267_v42  ;;  %v1933_v2 = vunpack.i.l.bf16 %v2930_v23 }
 0x140   : > { %725 = vrot.lane.b32.xlu1 %v2603_v12, %s2298_s15  ;;  %1094 = vmatpush.msra.mxu1 %v861_v22 }
 0x141   : > { %706 = vrot.lane.b32.xlu0 %v2614_v16, %s2300_s6  ;;  %1123 = vmatpush.msra.mxu2 %v2586_v4  ;;  %v734_v55 = vsel %vm582_vm6, %v1929_v54, %v1933_v2  ;;  %v3006_v16 = vld [vmem:[#allocation10] sm:$0xff] }
 0x142   : > { %1095 = vmatpush.msra.mxu1 %v836_v45  ;;  %1145 = vmatpush.msra.mxu3 %v734_v55 }
 0x143   : > { %1078 = vmatmul.f32.vlgmr.msra.gmra.mxu0 %v3006_v16  ;;  %1124 = vmatmul.f32.vlgmr.msra.gmra.mxu2 %v3006_v16 }
 0x148   : > { %700 = vrot.lane.b32.xlu1 %v2603_v12, %s2300_s6 }
 0x14b   : > { %1081 = vmatmul.f32.gmra.mxu0 %v3010_v44  ;;  %1127 = vmatmul.f32.gmra.mxu2 %v3010_v44 }
 0x150   : > { %756 = vrot.lane.b32.xlu1 %v2597_v9, %s2295_s18  ;;  %v1937_v4 = vpop.permute.xlu2 %1936 }
 0x151   : > { %v1938_v58 = vunpack.i.l.bf16 %v1937_v4  ;;  %v1939_v12 = vunpack.i.h.bf16 %v1937_v4 }
 0x153   : > { %1263 = vmatpush.msrb.mxu0 %v1938_v58 }
 0x155   : > { %1264 = vmatpush.msrb.mxu0 %v1939_v12 }
 0x158   : > { %v1952_v9 = vpop.permute.xlu2 %1951 }
 0x159   : > { %v1953_v24 = vunpack.i.l.bf16 %v1952_v9  ;;  %v1954_v57 = vunpack.i.h.bf16 %v1952_v9  ;;  %v3030_v9 = vld [vmem:[#allocation10 + $0x8] sm:$0xff] }
 0x160   : > { %v1942_v31 = vpop.permute.xlu0 %1941 }
 0x161   : > { %v1943_v18 = vunpack.i.l.bf16 %v1942_v31  ;;  %v1944_v47 = vunpack.i.h.bf16 %v1942_v31 }
 0x163   : > { %1265 = vmatpush.msrb.mxu0 %v1943_v18 }
 0x165   : > { %1266 = vmatpush.msrb.mxu0 %v1944_v47 }
 0x167   : > { %1267 = vmatpush.msrb.mxu0 %v1953_v24  ;;  %v3269_v24 = vunpack.i.h.bf16 %v2740_v21  ;;  %v3272_v21 = vunpack.i.l.bf16 %v2809_v6 }
 0x169   : > { %1268 = vmatpush.msrb.mxu0 %v1954_v57 }
 0x170   : > { %v1947_v26 = vpop.permute.xlu1 %1946  ;;  %v1967_v46 = vpop.permute.xlu2 %1966 }
 0x171   : > { %v1948_v40 = vunpack.i.l.bf16 %v1947_v26  ;;  %v1949_v56 = vunpack.i.h.bf16 %v1947_v26  ;;  %v1968_v0 = vunpack.i.l.bf16 %v1967_v46  ;;  %v1969_v1 = vunpack.i.h.bf16 %v1967_v46 }
 0x173   : > { %1342 = vmatpush.msrb.mxu2 %v1948_v40 }
 0x175   : > { %1343 = vmatpush.msrb.mxu2 %v1949_v56 }
 0x178   : > { %v1987_v34 = vpop.permute.xlu2 %1986  ;;  %v1962_v3 = vpop.permute.xlu1 %1961 }
 0x179   : > { %v1989_v32 = vunpack.i.h.bf16 %v1987_v34  ;;  %v1957_v36 = vpop.permute.xlu0 %1956  ;;  %v1963_v13 = vunpack.i.l.bf16 %v1962_v3  ;;  %v1964_v63 = vunpack.i.h.bf16 %v1962_v3  ;;  %v1988_v12 = vunpack.i.l.bf16 %v1987_v34 }
 0x17a   : > { %v1958_v59 = vunpack.i.l.bf16 %v1957_v36  ;;  %v1959_v14 = vunpack.i.h.bf16 %v1957_v36  ;;  %v3270_v36 = vunpack.i.l.bf16 %v2893_v28 }
 0x17b   : > { %1269 = vmatpush.msrb.mxu0 %v1963_v13  ;;  %v811_v30 = vsel %vm810_vm3, %v1989_v32, %v3268_v7 }
 0x17c   : > { %1344 = vmatpush.msrb.mxu2 %v1958_v59  ;;  %1096 = vmatpush.msra.mxu1 %v811_v30  ;;  %v3271_v59 = vunpack.i.h.bf16 %v2738_v20 }
 0x17d   : > { %1270 = vmatpush.msrb.mxu0 %v1964_v63  ;;  %v3273_v63 = vunpack.i.h.bf16 %v2687_v43 }
 0x17e   : > { %1345 = vmatpush.msrb.mxu2 %v1959_v14 }
 0x17f   : > { %1271 = vmatpush.msrb.mxu0 %v2943_v5 }
 0x180   : > { %1346 = vmatpush.msrb.mxu2 %v1968_v0  ;;  %1585 = vmatmul.msk.f32.vlgmr.msrb.gmra.mxu0 %vm1252_vm8, %v3010_v44  ;;  %v2002_v4 = vpop.permute.xlu2 %2001  ;;  %v3274_v0 = vunpack.i.h.bf16 %v2787_v62 }
 0x181   : > { %v1307_v38 = vpop.permute.xlu0 %1306  ;;  %v2004_v46 = vunpack.i.h.bf16 %v2002_v4  ;;  %v2003_v40 = vunpack.i.l.bf16 %v2002_v4  ;;  %v3276_v4 = vunpack.i.h.bf16 %v2841_v39 }
 0x182   : > { %1347 = vmatpush.msrb.mxu2 %v1969_v1 }
 0x183   : > { %v759_v30 = vsel %vm758_vm4, %v2004_v46, %v3272_v21  ;;  %v913_v14 = vsel %vm758_vm4, %v3273_v63, %v2003_v40 }
 0x189   : > { %v3020_v15 = vpop.permute.xlu0 %1976  ;;  %v860_v57 = vpop.permute.xlu2 %859 }
 0x18a   : > { %v1979_v5 = vunpack.i.h.bf16 %v3020_v15  ;;  %v1978_v39 = vunpack.i.l.bf16 %v3020_v15 }
 0x191   : > { %v3022_v22 = vpop.permute.xlu0 %1991  ;;  %v835_v1 = vpop.permute.xlu2 %834 }
 0x192   : > { %v838_v62 = vsel %vm758_vm4, %v3276_v4, %v835_v1 }
 0x198   : > { %v1972_v42 = vpop.permute.xlu1 %1971 }
 0x199   : > { %v1973_v45 = vunpack.i.l.bf16 %v1972_v42  ;;  %v1974_v55 = vunpack.i.h.bf16 %v1972_v42  ;;  %v2007_v31 = vpop.permute.xlu0 %2006  ;;  %v732_v46 = vpop.permute.xlu2 %731 }
 0x19a   : > { %v2008_v32 = vunpack.i.l.bf16 %v2007_v31  ;;  %v2009_v42 = vunpack.i.h.bf16 %v2007_v31 }
 0x19b   : > { %1348 = vmatpush.msrb.mxu2 %v1973_v45 }
 0x19c   : > { %v888_v20 = vsel %vm810_vm3, %v3274_v0, %v2008_v32  ;;  %v3282_v32 = vunpack.i.h.bf16 %v2809_v6 }
 0x19d   : > { %1349 = vmatpush.msrb.mxu2 %v1974_v55  ;;  %v3275_v55 = vunpack.i.h.bf16 %v2813_v10 }
 0x19f   : > { %1350 = vmatpush.msrb.mxu2 %v1307_v38  ;;  %v863_v43 = vsel %vm784_vm2, %v3275_v55, %v860_v57 }
 0x1a0   : > { %1586 = vmatmul.msk.f32.vlgmr.msrb.gmra.mxu2 %vm1252_vm8, %v2964_v60  ;;  %v963_v60 = vsel %vm810_vm3, %v3269_v24, %v1988_v12  ;;  %v3278_v24 = vunpack.i.h.bf16 %v2893_v28  ;;  %v3279_v28 = vunpack.i.l.bf16 %v2736_v19 }
 0x1a1   : > { %v3027_v58 = vpop.permute.xlu1 %1981 }
 0x1a2   : > { %v1983_v18 = vunpack.i.l.bf16 %v3027_v58  ;;  %v504_v3 = vpop.permute.xlu0 %503 }
 0x1a4   : > { %v709_v47 = vsel %vm556_vm7, %v1979_v5, %v1983_v18 }
 0x1a5   : > { %1146 = vmatpush.msra.mxu3 %v709_v47  ;;  %v3277_v47 = vunpack.i.h.bf16 %v2868_v27  ;;  %v1993_v27 = vunpack.i.l.bf16 %v3022_v22 }
 0x1a6   : > { %1581 = vmatmul.msk.f32.vlgmr.msra.gmra.mxu3 %vm1055_vm9, %v3030_v9 }
 0x1a7   : > { %1182 = vmatpush.msrb.mxu3 %v963_v60  ;;  %v813_v31 = vsel %vm810_vm3, %v3277_v47, %v2009_v42  ;;  %v1928_v60 = vunpack.i.l.bf16 %v2993_v48  ;;  %v3280_v48 = vunpack.i.l.bf16 %v2772_v53  ;;  %v1994_v53 = vunpack.i.h.bf16 %v3022_v22 }
 0x1a9   : > { %v533_v23 = vsel %vm530_vm5, %v1908_v52, %v1994_v53 }
 0x1aa   : > { %v1997_v26 = vpop.permute.xlu1 %1996  ;;  %v783_v12 = vpop.permute.xlu0 %782 }
 0x1ab   : > { %v1999_v56 = vunpack.i.h.bf16 %v1997_v26  ;;  %v1998_v34 = vunpack.i.l.bf16 %v1997_v26  ;;  %v660_v26 = vsel %vm582_vm6, %v3279_v28, %v1928_v60 }
 0x1ad   : > { %v785_v13 = vsel %vm784_vm2, %v1999_v56, %v3270_v36  ;;  %v938_v7 = vsel %vm784_vm2, %v3271_v59, %v1998_v34  ;;  %v1984_v56 = vunpack.i.h.bf16 %v3027_v58  ;;  %v3281_v34 = vunpack.i.h.bf16 %v2839_v49 }
 0x1ae   : > { %1097 = vmatpush.msra.mxu1 %v785_v13  ;;  %1183 = vmatpush.msrb.mxu3 %v938_v7  ;;  %v735_v36 = vsel %vm582_vm6, %v1933_v2, %v732_v46  ;;  %v507_v2 = vsel %vm392_vm1, %v2674_v37, %v504_v3 }
 0x1af   : > { %1582 = vmatmul.msk.f32.gmra.mxu3 %vm1055_vm9, %v2648_v25  ;;  %v559_v6 = vsel %vm556_vm7, %v1894_v29, %v1984_v56 }
 0x1b0   : > { %1098 = vmatpush.msra.mxu1 %v759_v30  ;;  %1184 = vmatpush.msrb.mxu3 %v913_v14 }
 0x1b2   : > { %v726_v38 = vpop.permute.xlu1 %725  ;;  %1185 = vmatpush.msrb.mxu3 %v888_v20 }
 0x1b3   : > { %v733_v45 = vsel %vm582_vm6, %v726_v38, %v1929_v54  ;;  %v787_v54 = vsel %vm784_vm2, %v3278_v24, %v783_v12  ;;  %v707_v15 = vpop.permute.xlu0 %706 }
 0x1b4   : > { %1099 = vmatpush.msra.mxu1 %v733_v45  ;;  %1186 = vmatpush.msrb.mxu3 %v863_v43  ;;  %v710_v49 = vsel %vm556_vm7, %v1983_v18, %v707_v15 }
 0x1b6   : > { %1187 = vmatpush.msrb.mxu3 %v838_v62 }
 0x1b8   : > { %1188 = vmatpush.msrb.mxu3 %v813_v31 }
 0x1ba   : > { %v701_v10 = vpop.permute.xlu1 %700  ;;  %1189 = vmatpush.msrb.mxu3 %v787_v54 }
 0x1bb   : > { %v708_v57 = vsel %vm556_vm7, %v701_v10, %v1979_v5  ;;  %v635_v5 = vsel %vm556_vm7, %v3280_v48, %v1978_v39 }
 0x1bc   : > { %1100 = vmatpush.msra.mxu1 %v708_v57 }
 0x1bd   : > { %1579 = vmatmul.msk.f32.vlgmr.msra.gmra.mxu1 %vm1055_vm9, %v3030_v9 }
 0x1be   : > { %1154 = vmatpush.msrb.mxu1 %v2925_v41  ;;  %v610_v41 = vsel %vm530_vm5, %v3281_v34, %v1993_v27 }
 0x1c0   : > { %1155 = vmatpush.msrb.mxu1 %v660_v26  ;;  %v1079_v37 = vpop.f32.mrf.mxu0 }
 0x1c2   : > { %1156 = vmatpush.msrb.mxu1 %v635_v5  ;;  %v757_v40 = vpop.permute.xlu1 %756 }
 0x1c3   : > { %v761_v19 = vsel %vm758_vm4, %v3282_v32, %v757_v40 }
 0x1c4   : > { %1157 = vmatpush.msrb.mxu1 %v610_v41  ;;  %1190 = vmatpush.msrb.mxu3 %v761_v19 }
 0x1c5   : > { %1580 = vmatmul.msk.f32.gmra.mxu1 %vm1055_vm9, %v2648_v25 }
 0x1c6   : > { %1158 = vmatpush.msrb.mxu1 %v2948_v8  ;;  %1191 = vmatpush.msrb.mxu3 %v735_v36  ;;  %v460_v8 = vld [vmem:[%s2564_s13 + $0x10] sm:$0xff]  ;;  %s1593_s13 = smul.u32 24, %s3284_s14 }
 0x1c8   : > { %1159 = vmatpush.msrb.mxu1 %v559_v6  ;;  %1192 = vmatpush.msrb.mxu3 %v710_v49  ;;  %s1405_s29 = sadd.s32 %s1593_s13, %s1592_s4 }
 0x1c9   : > { %1583 = vmatmul.msk.f32.vlgmr.msrb.gmra.mxu3 %vm1055_vm9, %v3030_v9  ;;  %s1587_s2 = sshll.u32 %s1405_s29, 3 }
 0x1ca   : > { %1160 = vmatpush.msrb.mxu1 %v533_v23  ;;  %s1407_s15 = scalar_lea.hbm %s3285_s10, %s1587_s2 }
 0x1cb   : > { %s1411_s6 = sshll.u32 %s1407_s15, 4  ;;  %s1412_s6 = int_to_ptr.hbm [resolvable:$true] %s1411_s6 }
 0x1cc   : > { %1161 = vmatpush.msrb.mxu1 %v507_v2 }
 0x1ce   : > { %1162 = vmatpush.msrb.mxu1 %v2731_v17  ;;  %v1082_v17 = vpop.f32.mrf.mxu0 }
 0x1d0   : > { %1163 = vmatpush.msrb.mxu1 %v460_v8 }
 0x1d1   : > { %1584 = vmatmul.msk.f32.gmra.mxu3 %vm1055_vm9, %v2648_v25  ;;  %v1125_v25 = vpop.f32.mrf.mxu2 }
 0x1d2   : > { %1164 = vmatpush.msrb.mxu1 %v2708_v61 }
 0x1d4   : > { %1165 = vmatpush.msrb.mxu1 %v2670_v35 }
 0x1d6   : > { %1166 = vmatpush.msrb.mxu1 %v404_v33 }
 0x1d8   : > { %1167 = vmatpush.msrb.mxu1 %v2694_v50 }
 0x1d9   : > { %v1128_v61 = vpop.f32.mrf.mxu2 }
 0x1da   : > { %1168 = vmatpush.msrb.mxu1 %v2697_v51 }
 0x1dc   : > { %1169 = vmatpush.msrb.mxu1 %v346_v11 }
 0x1dd   : > { %1170 = vmatmul.f32.vlgmr.msrb.gmra.mxu1 %v3006_v16 }
 0x1e5   : > { %1173 = vmatmul.f32.gmra.mxu1 %v3010_v44 }
 0x1fd   : > { %v1273_v29 = vpop.f32.mrf.mxu0 }
 0x1fe   : > { %1278 = vrot.lane.b32.xlu1 %v1273_v29, %s2302_s8  ;;  %s2144_s8 = sshra.s32 %s1412_s6, 4  ;;  %s2145_s8 = int_to_ptr.hbm [resolvable:$true] %s2144_s8 }
 0x1ff   : > { %s2146_s19 = scalar_lea.hbm %s2145_s8, 24  ;;  %p2151_p11 = scmp.lt.s32.totalorder %s2145_s8, %s3285_s10 }
 0x200   : > { %p2147_p8 = scmp.ne.s32.totalorder %s2145_s8, %s2146_s19  ;;  %p2152_p12 = scmp.lt.s32.totalorder %s2150_s30, %s2146_s19 }
 0x202   : > { %p2148_p10 = pnand %p2147_p8, %p2504_p4  ;;  %p2153_p5 = por %p2152_p12, %p2151_p11 }
 0x204   : > { %p2149_p0 = pneg %p2148_p10 }
 0x206   : > { %p2154_p6 = pnand %p2153_p5, %p2149_p0 }
 0x223   : > { %v1352_v35 = vpop.f32.mrf.mxu2 }
 0x224   : > { %1357 = vrot.lane.b32.xlu2 %v1352_v35, %s2304_s5 }
 0x229   : > { %v1148_v50 = vpop.f32.mrf.mxu3 }
 0x22a   : > { %v1149_v52 = vadd.f32 %v1148_v50, %v1125_v25 }
 0x22c   : > { %v1370_v31 = vmul.f32 0.01, %v1149_v52  ;;  %vm1367_vm0 = vcmp.ge.f32.partialorder %v1149_v52, 0.0 }
 0x22e   : > { %v1373_v10 = vsel %vm1367_vm0, %v1149_v52, %v1370_v31 }
 0x232   : > { %v1151_v22 = vpop.f32.mrf.mxu3 }
 0x233   : > { %v1152_v51 = vadd.f32 %v1151_v22, %v1128_v61 }
 0x235   : > { %1204 = vst [vmem:[#allocation3 + $0x20] sm:$0xff] %v1152_v51 }
 0x23a   : > { %v1102_v58 = vpop.f32.mrf.mxu1 }
 0x23b   : > { %v1103_v16 = vadd.f32 %v1102_v58, %v1079_v37 }
 0x23d   : > { %v1369_v9 = vmul.f32 0.01, %v1103_v16  ;;  %vm1366_vm10 = vcmp.ge.f32.partialorder %v1103_v16, 0.0 }
 0x23f   : > { %v1372_v13 = vsel %vm1366_vm10, %v1103_v16, %v1369_v9 }
 0x242   : > { %v1105_v18 = vpop.f32.mrf.mxu1 }
 0x243   : > { %v1106_v44 = vadd.f32 %v1105_v18, %v1082_v17 }
 0x245   : > { %vm1378_vm11 = vcmp.ge.f32.partialorder %v1106_v44, 0.0  ;;  %v1381_v3 = vmul.f32 0.01, %v1106_v44 }
 0x247   : > { %v1384_v59 = vsel %vm1378_vm11, %v1106_v44, %v1381_v3 }
 0x248   : > { %v1387_v7 = vadd.f32 %v1384_v59, %v1372_v13 }
 0x24a   : > { %1390 = vst [vmem:[%s3126_s11] sm:$0xff] %v1387_v7 }
 0x24c   : > { %v1194_v21 = vpop.f32.mrf.mxu3 }
 0x254   : > { %v1197_v14 = vpop.f32.mrf.mxu3 }
 0x25a   : > { %v1171_v30 = vpop.f32.mrf.mxu1 }
 0x25b   : > { %v1195_v63 = vadd.f32 %v1194_v21, %v1171_v30 }
 0x25d   : > { %v1371_v0 = vmul.f32 0.01, %v1195_v63  ;;  %vm1368_vm12 = vcmp.ge.f32.partialorder %v1195_v63, 0.0 }
 0x25f   : > { %v1374_v38 = vsel %vm1368_vm12, %v1195_v63, %v1371_v0 }
 0x262   : > { %v1174_v20 = vpop.f32.mrf.mxu1 }
 0x263   : > { %v1198_v1 = vadd.f32 %v1197_v14, %v1174_v20 }
 0x265   : > { %vm1380_vm13 = vcmp.ge.f32.partialorder %v1198_v1, 0.0  ;;  %v1383_v42 = vmul.f32 0.01, %v1198_v1 }
 0x267   : > { %v1386_v45 = vsel %vm1380_vm13, %v1198_v1, %v1383_v42 }
 0x268   : > { %v1389_v55 = vadd.f32 %v1386_v45, %v1374_v38 }
 0x26a   : > { %1392 = vst [vmem:[%s3126_s11 + $0x10] sm:$0xff] %v1389_v55 }
 0x270   : > { %v1279_v43 = vpop.permute.xlu1 %1278 }
 0x271   : > { %v1281_v4 = vsub.f32 %v1152_v51, %v1279_v43 }
 0x273   : > { %1283 = vst.msk [vmem:[#allocation3 + $0x20] sm:$0xff] %vm1282_vm14, %v1281_v4 }
 0x27a   : > { %v1355_v12 = vld [vmem:[#allocation3 + $0x20] sm:$0xff] }
 0x27e   : > { %v1358_v62 = vpop.permute.xlu2 %1357 }
 0x27f   : > { %v1360_v47 = vsub.f32 %v1355_v12, %v1358_v62 }
 0x281   : > { %1362 = vst.msk [vmem:[#allocation3 + $0x20] sm:$0xff] %vm1361_vm15, %v1360_v47 }
 0x288   : > { %v1376_v24 = vld [vmem:[#allocation3 + $0x20] sm:$0xff] }
 0x289   : > { %vm1379_vm1 = vcmp.ge.f32.partialorder %v1376_v24, 0.0  ;;  %v1382_v54 = vmul.f32 0.01, %v1376_v24 }
 0x28b   : > { %v1385_v60 = vsel %vm1379_vm1, %v1376_v24, %v1382_v54 }
 0x28c   : > { %v1388_v57 = vadd.f32 %v1385_v60, %v1373_v10 }
 0x28e   : > { %1391 = vst [vmem:[%s3126_s11 + $0x8] sm:$0xff] %v1388_v57 }
 0x28f   : > { %2157 = shalt.err (!%p2154_p6)
}
 0x290   : > { %1604 = dma.vmem_to_hbm [thread:$0]  (%p2504_p4), %s1410_s1, 384, %s1412_s6, %s1394_s7  }
 0x291 PF: > { %p1627_p7 = scmp.ge.s32.totalorder %s2288_s28, 2  ;;  %s1423_s3 = sand.u32 1, %s2260_s21  }
 0x292   : > { %p3286_p13 = scmp.ne.s32.totalorder %s3256_s9, 0  ;;  %s1424_s11 = scalar_lea.sflag [#allocation6], %s1423_s3 }
 0x294   : > { %p1621_p3 = pnand %p1627_p7, %p3286_p13 }
 0x296   : > { %p1622_p2 = pneg %p1621_p3 }
 0x298   : > { %2231 = dma.done.wait (%p1622_p2), %s1424_s11, 384  }
 0x299   : > { %2233 = vsyncadd (%p1622_p2), %s1424_s11, 4294966912  ;;  %s24_s28 = sadd.s32 1, %s2288_s28   ;;  %s3288_s18 = sld [smem:[#allocation18_spill]] }
 0x29a   : > { %p3153_p1 = scmp.ge.s32.totalorder %s24_s28, 18   ;;  %s3289_s24 = sld [smem:[#allocation21_spill]] }
 0x29b   : > { %s3290_s26 = sld [smem:[#allocation22_spill]]  ;;  %s3293_s15 = smov %s2240_s16 }
 0x29c   : > { %s3291_s9 = sld [smem:[#allocation23_spill]]  ;;  %s3294_s16 = smov %s2244_s17 }
 0x29d   : > { %s3292_s27 = sld [smem:[#allocation24_spill]]  ;;  %s3295_s17 = smov %s2520_s0 }
 0x29e   : > { %s3296_s19 = smov %s2256_s20  ;;  %s3297_s20 = smov %s2439_s25 }
 0x29f   : > { %s3298_s21 = smov %s2264_s22  ;;  %s3299_s22 = smov %s2268_s23 }
 0x2a0   : > { %s3300_s23 = smov %s2484_s12  ;;  %23 = sbr.rel (!%p3153_p1) target bundleno = 19 (0x13), region = 109 }
 0x2a1   : > { %s3301_s25 = smov %s3290_s26 }
 0x2a2   : > { %s3302_s26 = smov %s3291_s9 }
 0x2a5   :  { %1430 = vsyncpa [#allocation5], 1 }
 0x2a6   :  { %1432 = vsyncpa [#allocation5 + $0x1], 1 }
 0x2a7   :  { %1433 = vsyncpa [#allocation8], 1 }
 0x2a8   :  { %1435 = vsyncpa [#allocation8 + $0x1], 1 }
 0x2a9   :  { %1436 = vsyncpa [#allocation11], 1 }
 0x2aa   :  { %1437 = vsyncpa [#allocation6], 1 }
 0x2ab   :  { %1439 = vsyncpa [#allocation6 + $0x1], 1 }

</bundles_post_ra>
